<compile_context>
chip_gen: v7x
topology: tpu7x:2x2x1
jax: 0.10.0
libtpu: 0.0.40
codegen_flags: <defaults>
</compile_context>

<pallas_src>
import functools

import jax
import jax.numpy as jnp
from jax.experimental import pallas as pl
from jax.experimental.pallas import tpu as pltpu


def _round_up(x, m):
    return ((x + m - 1) // m) * m


def residual_sine_kernel(x_ref, w1_ref, b1_ref, w2_ref, b2_ref, o_ref, *, weight_2):
    # omega_0 and weight_1 are already folded into w1/b1/w2/b2 by the wrapper:
    #   w1 = omega_0 * weight_1 * W1^T      b1 = omega_0 * b1
    #   w2 = omega_0 * W2^T                 b2 = omega_0 * b2
    x = x_ref[...]                                                  # (tm, F_pad)
    h1 = jnp.dot(x, w1_ref[...], preferred_element_type=jnp.float32) + b1_ref[...]
    sine_1 = jnp.sin(h1)                                            # f32, EUP
    h2 = jnp.dot(sine_1.astype(w2_ref.dtype), w2_ref[...],
                 preferred_element_type=jnp.float32) + b2_ref[...]
    sine_2 = jnp.sin(h2)
    res = x.astype(jnp.float32) + sine_2
    if weight_2 != 1.0:                                             # static fold
        res = weight_2 * res
    o_ref[...] = res.astype(o_ref.dtype)


def _build_and_run(x_pad, w1s, b1s, w2s, b2s, *, tm, weight_2, out_dtype,
                   vmem_limit_bytes, single_buffer_weights):
    N_pad, F_pad = x_pad.shape
    grid = (N_pad // tm,)

    resident_kw = {}
    if single_buffer_weights:
        # Constant-index blocks never change across the grid; double-buffering
        # them only doubles their VMEM footprint.
        resident_kw = dict(pipeline_mode=pl.Buffered(1))

    kernel = functools.partial(residual_sine_kernel, weight_2=float(weight_2))
    return pl.pallas_call(
        kernel,
        out_shape=jax.ShapeDtypeStruct((N_pad, F_pad), out_dtype),
        grid_spec=pltpu.PrefetchScalarGridSpec(
            num_scalar_prefetch=0,
            grid=grid,
            in_specs=[
                pl.BlockSpec((tm, F_pad), lambda i: (i, 0)),                    # x tile
                pl.BlockSpec((F_pad, F_pad), lambda i: (0, 0), **resident_kw),  # W1^T (resident)
                pl.BlockSpec((1, F_pad), lambda i: (0, 0), **resident_kw),      # b1
                pl.BlockSpec((F_pad, F_pad), lambda i: (0, 0), **resident_kw),  # W2^T (resident)
                pl.BlockSpec((1, F_pad), lambda i: (0, 0), **resident_kw),      # b2
            ],
            out_specs=pl.BlockSpec((tm, F_pad), lambda i: (i, 0)),
        ),
        compiler_params=pltpu.CompilerParams(
            dimension_semantics=("parallel",),
            vmem_limit_bytes=vmem_limit_bytes,
        ),
    )(x_pad, w1s, b1s, w2s, b2s)


def residual_sine_layer(x, w1, b1, w2, b2, *,
                        omega_0=30.0, weight_1=1.0, weight_2=1.0, tm=512):
    """x: (N, F). w1/w2: PyTorch layout (out_features, in_features). b: (F,)."""
    N, F = x.shape
    out_dtype = x.dtype
    # Native bf16 MXU path when the model runs in bf16; f32 otherwise.
    compute_dtype = jnp.bfloat16 if x.dtype == jnp.bfloat16 else jnp.float32

    # Fold omega_0 / weight_1 into weights & biases once, outside the hot loop.
    w1s = (float(omega_0) * float(weight_1)) * jnp.asarray(w1, jnp.float32).T
    w2s = float(omega_0) * jnp.asarray(w2, jnp.float32).T
    b1s = (float(omega_0) * jnp.asarray(b1, jnp.float32)).reshape(1, F)
    b2s = (float(omega_0) * jnp.asarray(b2, jnp.float32)).reshape(1, F)

    # Lane-dense feature dim: pad to a multiple of 128 (zero pad is exact:
    # padded columns/rows contribute 0 and are sliced off at the end).
    F_pad = _round_up(F, 128)
    if F_pad != F:
        dF = F_pad - F
        w1s = jnp.pad(w1s, ((0, dF), (0, dF)))
        w2s = jnp.pad(w2s, ((0, dF), (0, dF)))
        b1s = jnp.pad(b1s, ((0, 0), (0, dF)))
        b2s = jnp.pad(b2s, ((0, 0), (0, dF)))
    w1s = w1s.astype(compute_dtype)
    w2s = w2s.astype(compute_dtype)

    # Row tiling: large tiles amortize per-step overhead (~0.35us/step); clamp
    # so small batches still yield >= 2 grid steps (keeps both TensorCores busy
    # on v7x via the "parallel" grid axis).
    tm = max(8, (int(tm) // 8) * 8)
    tm = min(tm, max(8, _round_up(max(N // 2, 1), 8)))
    N_pad = _round_up(N, tm)

    x_pad = x
    if N_pad != N or F_pad != F:
        x_pad = jnp.pad(x, ((0, N_pad - N), (0, F_pad - F)))

    # VMEM budget: double-buffered x/out tiles + resident weights + headroom,
    # capped below v7x's 64 MiB physical VMEM.
    io_item = max(jnp.dtype(out_dtype).itemsize, 4)
    w_item = jnp.dtype(compute_dtype).itemsize
    vmem_needed = (2 * 2 * tm * F_pad * io_item          # x + out, 2-deep pipeline
                   + 2 * F_pad * F_pad * w_item          # W1^T, W2^T resident
                   + 2 * F_pad * 4)                      # biases
    vmem_limit = int(min(max(2 * vmem_needed + (4 << 20), 16 << 20), 48 << 20))

    run = functools.partial(
        _build_and_run, tm=tm, weight_2=weight_2, out_dtype=out_dtype,
        vmem_limit_bytes=vmem_limit)
    try:
        out_pad = run(x_pad, w1s, b1s, w2s, b2s, single_buffer_weights=True)
    except Exception:
        # Fallback for JAX builds without pipeline_mode / Buffered(1) support.
        out_pad = run(x_pad, w1s, b1s, w2s, b2s, single_buffer_weights=False)

    return out_pad[:N, :F]


def _reference(x, w1, b1, w2, b2, omega_0, weight_1, weight_2):
    s1 = jnp.sin(omega_0 * ((weight_1 * x) @ w1.T + b1))
    s2 = jnp.sin(omega_0 * (s1 @ w2.T + b2))
    return weight_2 * (x + s2)


if __name__ == "__main__":
    features = 32
    N = 16
    omega_0 = 30.0
    ave_first, ave_second = False, True
    weight_1 = 0.5 if ave_first else 1.0
    weight_2 = 0.5 if ave_second else 1.0

    key = jax.random.PRNGKey(0)
    kx, kw1, kb1, kw2, kb2 = jax.random.split(key, 5)

    # SIREN init: U(-sqrt(6/F)/omega, sqrt(6/F)/omega) for weights.
    lim_w = jnp.sqrt(6.0 / features) / omega_0
    lim_b = 1.0 / jnp.sqrt(features)  # nn.Linear default bias init range
    w1 = jax.random.uniform(kw1, (features, features), jnp.float32, -lim_w, lim_w)
    w2 = jax.random.uniform(kw2, (features, features), jnp.float32, -lim_w, lim_w)
    b1 = jax.random.uniform(kb1, (features,), jnp.float32, -lim_b, lim_b)
    b2 = jax.random.uniform(kb2, (features,), jnp.float32, -lim_b, lim_b)

    x = jax.random.normal(kx, (N, features), jnp.float32)

    out = residual_sine_layer(
        x, w1, b1, w2, b2,
        omega_0=omega_0, weight_1=weight_1, weight_2=weight_2)
    out = jax.block_until_ready(out)

    ref = _reference(x, w1, b1, w2, b2, omega_0, weight_1, weight_2)
    assert out.shape == (N, features)
    assert jnp.allclose(out, ref, atol=1e-4, rtol=1e-4), "mismatch vs reference"

    # Ragged batch (not a multiple of the row tile) exercises the N-padding path.
    N2 = 1000
    x2 = jax.random.normal(jax.random.PRNGKey(1), (N2, features), jnp.float32)
    out2 = jax.block_until_ready(
        residual_sine_layer(x2, w1, b1, w2, b2, omega_0=omega_0,
                            weight_1=weight_1, weight_2=weight_2, tm=512))
    ref2 = _reference(x2, w1, b1, w2, b2, omega_0, weight_1, weight_2)
    assert out2.shape == (N2, features)
    assert jnp.allclose(out2, ref2, atol=1e-4, rtol=1e-4), "mismatch vs reference (ragged)"

    print("KERNEL_OK")
</pallas_src>

<mosaic_0001>
module attributes {stable_mosaic.version = 11 : i64} {
  func.func @residual_sine_kernel(%arg0: i32, %arg1: memref<8x128xf32, #tpu.memory_space<vmem>>, %arg2: memref<128x128xf32, #tpu.memory_space<vmem>>, %arg3: memref<1x128xf32, #tpu.memory_space<vmem>>, %arg4: memref<128x128xf32, #tpu.memory_space<vmem>>, %arg5: memref<1x128xf32, #tpu.memory_space<vmem>>, %arg6: memref<8x128xf32, #tpu.memory_space<vmem>>) attributes {dimension_semantics = [#tpu.dimension_semantics<parallel>], iteration_bounds = array<i64: 2>, scalar_prefetch = 0 : i64, scratch_operands = 0 : i64, tpu.core_type = #tpu.core_type<tc>, window_params = [{transform_indices = @transform_0, window_bounds = array<i64: 8, 128>}, {pipeline_mode = #tpu.pipeline_mode<synchronous>, transform_indices = @transform_1, window_bounds = array<i64: 128, 128>}, {pipeline_mode = #tpu.pipeline_mode<synchronous>, transform_indices = @transform_2, window_bounds = array<i64: 1, 128>}, {pipeline_mode = #tpu.pipeline_mode<synchronous>, transform_indices = @transform_3, window_bounds = array<i64: 128, 128>}, {pipeline_mode = #tpu.pipeline_mode<synchronous>, transform_indices = @transform_4, window_bounds = array<i64: 1, 128>}, {transform_indices = @transform_5, window_bounds = array<i64: 8, 128>}]} {
    %c0 = arith.constant 0 : index
    %c0_0 = arith.constant 0 : index
    %0 = vector.load %arg1[%c0, %c0_0] : memref<8x128xf32, #tpu.memory_space<vmem>>, vector<8x128xf32>
    %c0_1 = arith.constant 0 : index
    %c0_2 = arith.constant 0 : index
    %1 = vector.load %arg2[%c0_1, %c0_2] : memref<128x128xf32, #tpu.memory_space<vmem>>, vector<128x128xf32>
    %cst = arith.constant dense<0.000000e+00> : vector<8x128xf32>
    %2 = tpu.matmul %0, %1, %cst {dimension_numbers = #tpu.dot_dimension_numbers<[1], [0], [0], [1], [0, 0, 1, 1], [], []>} : vector<8x128xf32>, vector<128x128xf32>, vector<8x128xf32> -> vector<8x128xf32>
    %c0_3 = arith.constant 0 : index
    %c0_4 = arith.constant 0 : index
    %3 = vector.load %arg3[%c0_3, %c0_4] : memref<1x128xf32, #tpu.memory_space<vmem>>, vector<1x128xf32>
    %4 = vector.broadcast %3 : vector<1x128xf32> to vector<8x128xf32>
    %5 = arith.addf %2, %4 : vector<8x128xf32>
    %6 = math.sin %5 : vector<8x128xf32>
    %c0_5 = arith.constant 0 : index
    %c0_6 = arith.constant 0 : index
    %7 = vector.load %arg4[%c0_5, %c0_6] : memref<128x128xf32, #tpu.memory_space<vmem>>, vector<128x128xf32>
    %cst_7 = arith.constant dense<0.000000e+00> : vector<8x128xf32>
    %8 = tpu.matmul %6, %7, %cst_7 {dimension_numbers = #tpu.dot_dimension_numbers<[1], [0], [0], [1], [0, 0, 1, 1], [], []>} : vector<8x128xf32>, vector<128x128xf32>, vector<8x128xf32> -> vector<8x128xf32>
    %c0_8 = arith.constant 0 : index
    %c0_9 = arith.constant 0 : index
    %9 = vector.load %arg5[%c0_8, %c0_9] : memref<1x128xf32, #tpu.memory_space<vmem>>, vector<1x128xf32>
    %10 = vector.broadcast %9 : vector<1x128xf32> to vector<8x128xf32>
    %11 = arith.addf %8, %10 : vector<8x128xf32>
    %12 = math.sin %11 : vector<8x128xf32>
    %13 = arith.addf %0, %12 : vector<8x128xf32>
    %cst_10 = arith.constant 5.000000e-01 : f32
    %14 = vector.broadcast %cst_10 : f32 to vector<8x128xf32>
    %15 = arith.mulf %14, %13 : vector<8x128xf32>
    %c0_11 = arith.constant 0 : index
    %c0_12 = arith.constant 0 : index
    %16 = vector.load %arg6[%c0_11, %c0_12] : memref<8x128xf32, #tpu.memory_space<vmem>>, vector<8x128xf32>
    tpu.vector_store %arg6[%c0_11, %c0_12], %15 {strides = array<i32>} : memref<8x128xf32, #tpu.memory_space<vmem>>, vector<8x128xf32>,
    return
  }
  func.func @transform_0(%arg0: i32) -> (i32, i32) {
    %c0_i32 = arith.constant 0 : i32
    %c0_i32_0 = arith.constant 0 : i32
    return %arg0, %c0_i32 : i32, i32
  }
  func.func @transform_1(%arg0: i32) -> (i32, i32) {
    %c0_i32 = arith.constant 0 : i32
    %c0_i32_0 = arith.constant 0 : i32
    %c0_i32_1 = arith.constant 0 : i32
    return %c0_i32, %c0_i32_0 : i32, i32
  }
  func.func @transform_2(%arg0: i32) -> (i32, i32) {
    %c0_i32 = arith.constant 0 : i32
    %c0_i32_0 = arith.constant 0 : i32
    %c0_i32_1 = arith.constant 0 : i32
    return %c0_i32, %c0_i32_0 : i32, i32
  }
  func.func @transform_3(%arg0: i32) -> (i32, i32) {
    %c0_i32 = arith.constant 0 : i32
    %c0_i32_0 = arith.constant 0 : i32
    %c0_i32_1 = arith.constant 0 : i32
    return %c0_i32, %c0_i32_0 : i32, i32
  }
  func.func @transform_4(%arg0: i32) -> (i32, i32) {
    %c0_i32 = arith.constant 0 : i32
    %c0_i32_0 = arith.constant 0 : i32
    %c0_i32_1 = arith.constant 0 : i32
    return %c0_i32, %c0_i32_0 : i32, i32
  }
  func.func @transform_5(%arg0: i32) -> (i32, i32) {
    %c0_i32 = arith.constant 0 : i32
    %c0_i32_0 = arith.constant 0 : i32
    return %arg0, %c0_i32 : i32, i32
  }
}

module attributes {stable_mosaic.version = 11 : i64} {
  func.func @residual_sine_kernel(%arg0: i32, %arg1: memref<8x128xf32, #tpu.memory_space<vmem>>, %arg2: memref<128x128xf32, #tpu.memory_space<vmem>>, %arg3: memref<1x128xf32, #tpu.memory_space<vmem>>, %arg4: memref<128x128xf32, #tpu.memory_space<vmem>>, %arg5: memref<1x128xf32, #tpu.memory_space<vmem>>, %arg6: memref<8x128xf32, #tpu.memory_space<vmem>>) attributes {dimension_semantics = [#tpu.dimension_semantics<parallel>], iteration_bounds = array<i64: 2>, scalar_prefetch = 0 : i64, scratch_operands = 0 : i64, tpu.core_type = #tpu.core_type<tc>, window_params = [{transform_indices = @transform_0, window_bounds = array<i64: 8, 128>}, {pipeline_mode = #tpu.pipeline_mode<synchronous>, transform_indices = @transform_1, window_bounds = array<i64: 128, 128>}, {pipeline_mode = #tpu.pipeline_mode<synchronous>, transform_indices = @transform_2, window_bounds = array<i64: 1, 128>}, {pipeline_mode = #tpu.pipeline_mode<synchronous>, transform_indices = @transform_3, window_bounds = array<i64: 128, 128>}, {pipeline_mode = #tpu.pipeline_mode<synchronous>, transform_indices = @transform_4, window_bounds = array<i64: 1, 128>}, {transform_indices = @transform_5, window_bounds = array<i64: 8, 128>}]} {
    %c0 = arith.constant 0 : index
    %c0_0 = arith.constant 0 : index
    %0 = vector.load %arg1[%c0, %c0_0] : memref<8x128xf32, #tpu.memory_space<vmem>>, vector<8x128xf32>
    %c0_1 = arith.constant 0 : index
    %c0_2 = arith.constant 0 : index
    %1 = vector.load %arg2[%c0_1, %c0_2] : memref<128x128xf32, #tpu.memory_space<vmem>>, vector<128x128xf32>
    %cst = arith.constant dense<0.000000e+00> : vector<8x128xf32>
    %2 = tpu.matmul %0, %1, %cst {dimension_numbers = #tpu.dot_dimension_numbers<[1], [0], [0], [1], [0, 0, 1, 1], [], []>} : vector<8x128xf32>, vector<128x128xf32>, vector<8x128xf32> -> vector<8x128xf32>
    %c0_3 = arith.constant 0 : index
    %c0_4 = arith.constant 0 : index
    %3 = vector.load %arg3[%c0_3, %c0_4] : memref<1x128xf32, #tpu.memory_space<vmem>>, vector<1x128xf32>
    %4 = vector.broadcast %3 : vector<1x128xf32> to vector<8x128xf32>
    %5 = arith.addf %2, %4 : vector<8x128xf32>
    %6 = math.sin %5 : vector<8x128xf32>
    %c0_5 = arith.constant 0 : index
    %c0_6 = arith.constant 0 : index
    %7 = vector.load %arg4[%c0_5, %c0_6] : memref<128x128xf32, #tpu.memory_space<vmem>>, vector<128x128xf32>
    %cst_7 = arith.constant dense<0.000000e+00> : vector<8x128xf32>
    %8 = tpu.matmul %6, %7, %cst_7 {dimension_numbers = #tpu.dot_dimension_numbers<[1], [0], [0], [1], [0, 0, 1, 1], [], []>} : vector<8x128xf32>, vector<128x128xf32>, vector<8x128xf32> -> vector<8x128xf32>
    %c0_8 = arith.constant 0 : index
    %c0_9 = arith.constant 0 : index
    %9 = vector.load %arg5[%c0_8, %c0_9] : memref<1x128xf32, #tpu.memory_space<vmem>>, vector<1x128xf32>
    %10 = vector.broadcast %9 : vector<1x128xf32> to vector<8x128xf32>
    %11 = arith.addf %8, %10 : vector<8x128xf32>
    %12 = math.sin %11 : vector<8x128xf32>
    %13 = arith.addf %0, %12 : vector<8x128xf32>
    %cst_10 = arith.constant 5.000000e-01 : f32
    %14 = vector.broadcast %cst_10 : f32 to vector<8x128xf32>
    %15 = arith.mulf %14, %13 : vector<8x128xf32>
    %c0_11 = arith.constant 0 : index
    %c0_12 = arith.constant 0 : index
    %16 = vector.load %arg6[%c0_11, %c0_12] : memref<8x128xf32, #tpu.memory_space<vmem>>, vector<8x128xf32>
    tpu.vector_store %arg6[%c0_11, %c0_12], %15 {strides = array<i32>} : memref<8x128xf32, #tpu.memory_space<vmem>>, vector<8x128xf32>,
    return
  }
  func.func @transform_0(%arg0: i32) -> (i32, i32) {
    %c0_i32 = arith.constant 0 : i32
    %c0_i32_0 = arith.constant 0 : i32
    return %arg0, %c0_i32 : i32, i32
  }
  func.func @transform_1(%arg0: i32) -> (i32, i32) {
    %c0_i32 = arith.constant 0 : i32
    %c0_i32_0 = arith.constant 0 : i32
    %c0_i32_1 = arith.constant 0 : i32
    return %c0_i32, %c0_i32_0 : i32, i32
  }
  func.func @transform_2(%arg0: i32) -> (i32, i32) {
    %c0_i32 = arith.constant 0 : i32
    %c0_i32_0 = arith.constant 0 : i32
    %c0_i32_1 = arith.constant 0 : i32
    return %c0_i32, %c0_i32_0 : i32, i32
  }
  func.func @transform_3(%arg0: i32) -> (i32, i32) {
    %c0_i32 = arith.constant 0 : i32
    %c0_i32_0 = arith.constant 0 : i32
    %c0_i32_1 = arith.constant 0 : i32
    return %c0_i32, %c0_i32_0 : i32, i32
  }
  func.func @transform_4(%arg0: i32) -> (i32, i32) {
    %c0_i32 = arith.constant 0 : i32
    %c0_i32_0 = arith.constant 0 : i32
    %c0_i32_1 = arith.constant 0 : i32
    return %c0_i32, %c0_i32_0 : i32, i32
  }
  func.func @transform_5(%arg0: i32) -> (i32, i32) {
    %c0_i32 = arith.constant 0 : i32
    %c0_i32_0 = arith.constant 0 : i32
    return %arg0, %c0_i32 : i32, i32
  }
}

</mosaic_0001>

<bundles_post_ra>
// kernel: tpu_custom_call.1
= control target key start
LH: loop header
LB: loop body
LE: loop exit
PB: predicated region body
PF: predicated region fallthrough
CT: control target
= control target key end

     0   :  { %10 = vsyncpa [#allocation3], 0  ;;  %s1571_s0 = inlined_call_operand.hbm [shape: f32[16,128], index: 0, kind: input, shape index: {}]   ;;  %s1572_s1 = inlined_call_operand.hbm [shape: f32[128,128], index: 1, kind: input, shape index: {}]   ;;  %s1573_s2 = inlined_call_operand.vmem [shape: f32[1,128], index: 2, kind: input, shape index: {}]   ;;  %s1574_s3 = inlined_call_operand.hbm [shape: f32[128,128], index: 3, kind: input, shape index: {}]   ;;  %s1575_s4 = inlined_call_operand.vmem [shape: f32[1,128], index: 4, kind: input, shape index: {}]   ;;  %s1576_s5 = inlined_call_operand.hbm [shape: f32[16,128], index: 5, kind: output, shape index: {}]  }
   0x1   :  { %12 = vsyncpa [#allocation3 + $0x1], 0 }
   0x2   :  { %13 = vsyncpa [#allocation6], 0 }
   0x3   :  { %14 = vsyncpa [#allocation4], 0 }
   0x4   :  { %16 = vsyncpa [#allocation4 + $0x1], 0  ;;  %s1245_s18 = smov 0   ;;  %s1247_s19 = smov 0  }
   0x5   :  { %s1249_s20 = smov 0   ;;  %s1251_s21 = smov 0  }
   0x6 LB: > { %s1266_s22 = sadd.s32 4294967295, %s1198_s21   ;;  %s770_s23 = sadd.s32 4294967294, %s1198_s21   ;;  %s1198_s21 = sphi %s1251_s21, %s1596_s21   ;;  %s1194_s20 = sphi %s1249_s20, %s1595_s20   ;;  %s1190_s19 = sphi %s1247_s19, %s1594_s19   ;;  %s1186_s18 = sphi %s1245_s18, %s1593_s18  }
   0x7   : > { %p42_p0 = scmp.ne.s32.totalorder %s1190_s19, %s1186_s18  ;;  %p1577_p1 = scmp.eq.s32.totalorder %s1266_s22, 0 }
   0x8   : > { %p156_p3 = scmp.eq.s32.totalorder %s770_s23, 1  ;;  %p771_p5 = scmp.ge.s32.totalorder %s1198_s21, 1 }
   0x9   : > { %p1275_p4 = por %p1577_p1, %p42_p0  ;;  %p163_p7 = scmp.lt.s32.totalorder %s1198_s21, 3 }
   0xa   : > { %p1280_p6 = por %p156_p3, %p42_p0  ;;  %s1200_s27 = smov [#allocation5]  }
   0xb   : > { %s1580_s24 = scalar_select %p1275_p4, 1, 0 }
   0xc   : > { %s1581_s25 = scalar_select %p1280_p6, 1, 0 }
   0xd   : > { %p1285_p8 = pnand %p771_p5, %p163_p7  ;;  %s175_s28 = sshll.u32 %s1200_s27, 4  ;;  %s1289_s28 = int_to_ptr.vmem [resolvable:$true] %s175_s28 }
   0xe   : > { %s1201_s30 = smov [#allocation7]   ;;  %s1042_s9 = scalar_lea.hbm %s1572_s1, 2048 }
   0xf   : > { %p968_p9 = pneg %p1285_p8  ;;  %s191_s6 = sshll.u32 %s1201_s30, 4  ;;  %s1300_s6 = int_to_ptr.vmem [resolvable:$true] %s191_s6 }
  0x10   : > { %p1043_p12 = scmp.ne.s32.totalorder %s1572_s1, %s1042_s9  ;;  %p1049_p5 = scmp.lt.u32.totalorder %s1042_s9, %s1572_s1 }
  0x11   : > { %p1296_p11 = pnand %p968_p9, %p1577_p1 }
  0x13   : > { %p1044_p13 = pneg %p1296_p11 }
  0x15   : > { %p1045_p0 = pnand %p1044_p13, %p1043_p12 }
  0x17   : > { %p1046_p3 = pneg %p1045_p0 }
  0x19   : > { %p1051_p7 = pnand %p1049_p5, %p1046_p3 }
  0x1b   : > { %1054 = shalt.err (!%p1051_p7)
}
  0x1c   : > { %s1055_s14 = scalar_lea.vmem %s1289_s28, 2048  ;;  %p1063_p2 = scmp.lt.s32.totalorder %s1289_s28, %s1289_s28 }
  0x1d   : > { %p1056_p9 = scmp.ne.s32.totalorder %s1289_s28, %s1055_s14  ;;  %p1064_p12 = scmp.lt.s32.totalorder %s1055_s14, %s1055_s14 }
  0x1f   : > { %p1058_p10 = pnand %p1056_p9, %p1044_p13  ;;  %p1065_p0 = por %p1064_p12, %p1063_p2 }
  0x21   : > { %p1059_p1 = pneg %p1058_p10 }
  0x23   : > { %p1066_p6 = pnand %p1065_p0, %p1059_p1 }
  0x25   : > { %1069 = shalt.err (!%p1066_p6)
}
  0x26   : > { %s1202_s15 = smov 128   ;;  %s1203_s16 = smov 8  }
  0x27   : > { %971 = dma.hbm_to_vmem [thread:$0]  (!%p1296_p11), %s1572_s1, 2048, %s1289_s28, [#allocation6], %s1202_s15, %s1202_s15, %s1203_s16  }
  0x28   : > { %s1070_s7 = scalar_lea.hbm %s1574_s3, 2048 }
  0x29   : > { %p1071_p2 = scmp.ne.s32.totalorder %s1574_s3, %s1070_s7  ;;  %p1077_p10 = scmp.lt.u32.totalorder %s1070_s7, %s1574_s3 }
  0x2b   : > { %p1073_p1 = pnand %p1071_p2, %p1044_p13 }
  0x2d   : > { %p1074_p6 = pneg %p1073_p1 }
  0x2f   : > { %p1079_p3 = pnand %p1077_p10, %p1074_p6 }
  0x31   : > { %1082 = shalt.err (!%p1079_p3)
}
  0x32   : > { %s1083_s28 = scalar_lea.vmem %s1300_s6, 2048  ;;  %p1091_p12 = scmp.lt.s32.totalorder %s1300_s6, %s1300_s6 }
  0x33   : > { %p1084_p5 = scmp.ne.s32.totalorder %s1300_s6, %s1083_s28  ;;  %p1092_p0 = scmp.lt.s32.totalorder %s1083_s28, %s1083_s28 }
  0x35   : > { %p1086_p7 = pnand %p1084_p5, %p1044_p13  ;;  %p1093_p2 = por %p1092_p0, %p1091_p12 }
  0x37   : > { %p1087_p9 = pneg %p1086_p7 }
  0x39   : > { %p1094_p1 = pnand %p1093_p2, %p1087_p9 }
  0x3b   : > { %1097 = shalt.err (!%p1094_p1)
}
  0x3c   : > { %974 = dma.hbm_to_vmem [thread:$0]  (!%p1296_p11), %s1574_s3, 2048, %s1300_s6, [#allocation6], %s1202_s15, %s1202_s15, %s1203_s16  }
  0x3d   : > { %s1355_s14 = sadd.s32 1, %s1198_s21   ;;  %s29_s29 = sadd.s32 1, %s1194_s20 }
  0x3e   : > { %s26_s17 = ssub.s32 %s1198_s21, %s1355_s14  ;;  %p36_p13 = scmp.ne.s32.totalorder %s1194_s20, %s1190_s19 }
  0x3f   : > { %p27_p6 = scmp.eq.s32.totalorder %s26_s17, 0  ;;  %p37_p10 = scmp.eq.s32.totalorder %s1198_s21, 0 }
  0x40   : > { %p1584_p3 = scmp.eq.s32.totalorder %s1266_s22, 1  ;;  %p985_p7 = scmp.lt.s32.totalorder %s1198_s21, 2 }
  0x41   : > { %s1371_s27 = scalar_select %p27_p6, %s1194_s20, %s29_s29  }
  0x42   : > { %p1365_p5 = por %p1584_p3, %p36_p13  ;;  %p38_p9 = por %p37_p10, %p36_p13 }
  0x43   : > { %s208_s30 = sand.u32 1, %s1194_s20   ;;  %s776_s6 = sshll.u32 %s1198_s21, 7 }
  0x44   : > { %s1585_s23 = scalar_select %p1365_p5, 1, 0 }
  0x45   : > { %s775_s7 = sshll.u32 %s208_s30, 3  ;;  %s1378_s8 = scalar_lea.hbm %s1571_s0, %s776_s6 }
  0x46   : > { %s212_s9 = scalar_lea.vmem [#allocation2], %s775_s7  ;;  %p1382_p11 = pnand %p985_p7, %p38_p9 }
  0x47   : > { %s219_s10 = sshll.u32 %s212_s9, 4  ;;  %s209_s28 = scalar_lea.sflag [#allocation3], %s208_s30  ;;  %s1380_s10 = int_to_ptr.vmem [resolvable:$true] %s219_s10 }
  0x48   : > { %s1098_s12 = scalar_lea.hbm %s1378_s8, 128  ;;  %p1100_p0 = pneg %p1382_p11 }
  0x49   : > { %p1099_p12 = scmp.ne.s32.totalorder %s1378_s8, %s1098_s12  ;;  %s1103_s17 = scalar_lea.hbm %s1571_s0, 256 }
  0x4a   : > { %p1104_p13 = scmp.lt.u32.totalorder %s1378_s8, %s1571_s0  ;;  %p1105_p6 = scmp.lt.u32.totalorder %s1103_s17, %s1098_s12 }
  0x4b   : > { %p1101_p2 = pnand %p1100_p0, %p1099_p12  ;;  %p1107_p3 = scmp.lt.u32.totalorder %s1098_s12, %s1378_s8 }
  0x4c   : > { %p1106_p10 = por %p1105_p6, %p1104_p13 }
  0x4d   : > { %p1102_p1 = pneg %p1101_p2 }
  0x4e   : > { %p1108_p7 = por %p1107_p3, %p1106_p10 }
  0x50   : > { %p1109_p9 = pnand %p1108_p7, %p1102_p1 }
  0x52   : > { %1112 = shalt.err (!%p1109_p9)
}
  0x53   : > { %s1113_s30 = scalar_lea.vmem %s1380_s10, 128  ;;  %s1204_s15 = smov [#allocation2]  }
  0x54   : > { %p1114_p12 = scmp.ne.s32.totalorder %s1380_s10, %s1113_s30  ;;  %s1118_s16 = sshll.u32 %s1204_s15, 4  ;;  %s1119_s16 = int_to_ptr.vmem [resolvable:$false] %s1118_s16 }
  0x55   : > { %s1120_s9 = scalar_lea.vmem %s1119_s16, 256  ;;  %p1121_p4 = scmp.lt.s32.totalorder %s1380_s10, %s1119_s16 }
  0x56   : > { %p1116_p2 = pnand %p1114_p12, %p1100_p0  ;;  %p1122_p13 = scmp.lt.s32.totalorder %s1120_s9, %s1113_s30 }
  0x58   : > { %p1117_p5 = pneg %p1116_p2  ;;  %p1123_p6 = por %p1122_p13, %p1121_p4 }
  0x5a   : > { %p1124_p10 = pnand %p1123_p6, %p1117_p5 }
  0x5c   : > { %1127 = shalt.err (!%p1124_p10)
}
  0x5d   : > { %978 = dma.hbm_to_vmem [thread:$0]  (!%p1382_p11), %s1378_s8, 128, %s1380_s10, %s209_s28  }
  0x5e   : > { %228 = sbr.rel (%p1285_p8) target bundleno = 743 (0x2e7), region = 40  ;;  %s1414_s12 = sand.u32 (!%p1285_p8), 1, %s1190_s19  }
  0x5f   : > { %s778_s13 = sshll.u32 (!%p1285_p8), %s1414_s12, 3  ;;  %s231_s29 = scalar_lea.sflag (!%p1285_p8), [#allocation3], %s1414_s12 }
  0x60   : > { %s1420_s17 = scalar_lea.vmem (!%p1285_p8), [#allocation2], %s778_s13  ;;  %p1587_p4 = scmp.ne.s32.totalorder (!%p1285_p8), %s1580_s24, 0 }
  0x65   : > { %1173 = dma.done.wait (%p1587_p4), %s231_s29, 128  }
  0x66   : > { %1175 = vsyncadd (%p1587_p4), %s231_s29, 4294967168  ;;  %p1588_p5 = scmp.eq.s32.totalorder %s1266_s22, 0 }
  0x68   : > { %1177 = dma.done.wait (%p1588_p5), [#allocation6], 4096   ;;  %p1589_p8 = pmov %p1588_p5 }
  0x69   : > { %v1205_v0 = vmov 0.0|0.0   ;;  %vm1206_vm0 = vmmov 0   ;;  %v1207_v1 = vmov 0.0   ;;  %v270_v2 = vld [vmem:[#allocation5] sm:$0xff]  ;;  %v271_v3 = vld [vmem:[#allocation5 + $0x8] sm:$0xff]  ;;  %v272_v4 = vld [vmem:[#allocation5 + $0x10] sm:$0xff] }
  0x6a   : > { %1179 = vsyncadd (%p1589_p8), [#allocation6], 4294963200  ;;  %900 = vmatprep.subr.bf16.mxu0 %v1205_v0  ;;  %862 = vmatprep.mubr.msk.f32.mxu0 %vm1206_vm0, %v1207_v1  ;;  %v901_v5 = vpack.c.bf16 %v271_v3, %v270_v2  ;;  %v273_v6 = vld [vmem:[#allocation5 + $0x18] sm:$0xff]  ;;  %v274_v8 = vld [vmem:[#allocation5 + $0x20] sm:$0xff]  ;;  %v1209_v3 = vmov 2475754826  }
  0x6b   : > { %924 = vmatprep.subr.bf16.mxu1 %v1205_v0  ;;  %897 = vmatprep.mubr.msk.f32.mxu1 %vm1206_vm0, %v1207_v1  ;;  %v904_v7 = vpack.c.bf16 %v273_v6, %v272_v4  ;;  %v275_v9 = vld [vmem:[#allocation5 + $0x28] sm:$0xff]  ;;  %v276_v11 = vld [vmem:[#allocation5 + $0x30] sm:$0xff]  ;;  %v277_v12 = vld [vmem:[#allocation5 + $0x38] sm:$0xff]  ;;  %v1208_v1 = vmov 683565275   ;;  %s793_s11 = sshll.u32 %s1266_s22, 7 }
  0x6c   : > { %902 = vmatpush3.bf16.msra.mxu0 %v901_v5  ;;  %v907_v10 = vpack.c.bf16 %v275_v9, %v274_v8  ;;  %v910_v13 = vpack.c.bf16 %v277_v12, %v276_v11  ;;  %v278_v14 = vld [vmem:[#allocation5 + $0x40] sm:$0xff]  ;;  %v279_v15 = vld [vmem:[#allocation5 + $0x48] sm:$0xff]  ;;  %v280_v17 = vld [vmem:[#allocation5 + $0x50] sm:$0xff]  ;;  %v1210_v6 = vmov 2131351028   ;;  %s268_s28 = scalar_lea.vmem [#allocation8], %s778_s13  ;;  %s1527_s15 = scalar_lea.hbm %s1576_s5, %s793_s11 }
  0x6d   : > { %903 = vmatprep.subr.bf16.mxu0 %v1205_v0  ;;  %v913_v16 = vpack.c.bf16 %v279_v15, %v278_v14  ;;  %v281_v18 = vld [vmem:[#allocation5 + $0x58] sm:$0xff]  ;;  %v282_v20 = vld [vmem:[#allocation5 + $0x60] sm:$0xff]  ;;  %v283_v21 = vld [vmem:[#allocation5 + $0x68] sm:$0xff]  ;;  %v1211_v9 = vmov 2102212464   ;;  %s681_s7 = sshll.u32 %s268_s28, 4  ;;  %s1529_s7 = int_to_ptr.vmem [resolvable:$true] %s681_s7 }
  0x6e   : > { %v916_v19 = vpack.c.bf16 %v281_v18, %v280_v17  ;;  %v919_v22 = vpack.c.bf16 %v283_v21, %v282_v20  ;;  %v284_v23 = vld [vmem:[#allocation5 + $0x70] sm:$0xff]  ;;  %v285_v24 = vld [vmem:[#allocation5 + $0x78] sm:$0xff]  ;;  %v467_v27 = vld [vmem:[#allocation7] sm:$0xff]  ;;  %v1212_v12 = vmov 920167782   ;;  %s668_s16 = scalar_lea.sflag [#allocation4], %s1414_s12 }
  0x6f   : > { %v922_v25 = vpack.c.bf16 %v285_v24, %v284_v23  ;;  %v1440_v26 = vld [vmem:[%s1420_s17] sm:$0xff]  ;;  %v468_v28 = vld [vmem:[#allocation7 + $0x8] sm:$0xff]  ;;  %v471_v33 = vld [vmem:[#allocation7 + $0x20] sm:$0xff]  ;;  %v1213_v15 = vmov 1326507024   ;;  %s1128_s9 = scalar_lea.vmem %s1529_s7, 128 }
  0x70   : > { %905 = vmatpush3.bf16.msra.mxu0 %v904_v7  ;;  %v925_v29 = vpack.c.bf16 %v468_v28, %v467_v27  ;;  %v469_v30 = vld [vmem:[#allocation7 + $0x10] sm:$0xff]  ;;  %v470_v31 = vld [vmem:[#allocation7 + $0x18] sm:$0xff]  ;;  %v472_v34 = vld [vmem:[#allocation7 + $0x28] sm:$0xff]  ;;  %p1129_p11 = scmp.ne.s32.totalorder %s1529_s7, %s1128_s9  ;;  %p1590_p0 = scmp.ne.s32.totalorder %s1585_s23, 0 }
  0x71   : > { %906 = vmatprep.subr.bf16.mxu0 %v1205_v0  ;;  %v928_v32 = vpack.c.bf16 %v470_v31, %v469_v30  ;;  %v931_v35 = vpack.c.bf16 %v472_v34, %v471_v33  ;;  %v473_v36 = vld [vmem:[#allocation7 + $0x30] sm:$0xff]  ;;  %v474_v37 = vld [vmem:[#allocation7 + $0x38] sm:$0xff]  ;;  %v475_v39 = vld [vmem:[#allocation7 + $0x40] sm:$0xff]  ;;  %s1214_s22 = smov [#allocation8]  }
  0x72   : > { %926 = vmatpush3.bf16.msra.mxu1 %v925_v29  ;;  %v934_v38 = vpack.c.bf16 %v474_v37, %v473_v36  ;;  %v476_v40 = vld [vmem:[#allocation7 + $0x48] sm:$0xff]  ;;  %v477_v42 = vld [vmem:[#allocation7 + $0x50] sm:$0xff]  ;;  %v478_v43 = vld [vmem:[#allocation7 + $0x58] sm:$0xff]  ;;  %p1130_p1 = pnand %p1129_p11, %p1590_p0  ;;  %s1132_s13 = sshll.u32 %s1214_s22, 4  ;;  %s1133_s13 = int_to_ptr.vmem [resolvable:$false] %s1132_s13 }
  0x73   : > { %927 = vmatprep.subr.bf16.mxu1 %v1205_v0  ;;  %v937_v41 = vpack.c.bf16 %v476_v40, %v475_v39  ;;  %v940_v44 = vpack.c.bf16 %v478_v43, %v477_v42  ;;  %v479_v45 = vld [vmem:[#allocation7 + $0x60] sm:$0xff]  ;;  %v480_v46 = vld [vmem:[#allocation7 + $0x68] sm:$0xff]  ;;  %v481_v48 = vld [vmem:[#allocation7 + $0x70] sm:$0xff]  ;;  %s1134_s29 = scalar_lea.vmem %s1133_s13, 256  ;;  %p1135_p7 = scmp.lt.s32.totalorder %s1529_s7, %s1133_s13 }
  0x74   : > { %908 = vmatpush3.bf16.msra.mxu0 %v907_v10  ;;  %v943_v47 = vpack.c.bf16 %v480_v46, %v479_v45  ;;  %v482_v49 = vld [vmem:[#allocation7 + $0x78] sm:$0xff]  ;;  %v782_v51 = vld [vmem:[%s1573_s2] ss:$0 sm:$0xff]  ;;  %p1131_p3 = pneg %p1130_p1  ;;  %p1136_p9 = scmp.lt.s32.totalorder %s1134_s29, %s1128_s9 }
  0x75   : > { %909 = vmatprep.subr.bf16.mxu0 %v1205_v0  ;;  %v946_v50 = vpack.c.bf16 %v482_v49, %v481_v48 }
  0x76   : > { %929 = vmatpush3.bf16.msra.mxu1 %v928_v32  ;;  %p1137_p12 = por %p1136_p9, %p1135_p7 }
  0x77   : > { %930 = vmatprep.subr.bf16.mxu1 %v1205_v0 }
  0x78   : > { %911 = vmatpush3.bf16.msra.mxu0 %v910_v13  ;;  %p1138_p2 = pnand %p1137_p12, %p1131_p3 }
  0x79   : > { %912 = vmatprep.subr.bf16.mxu0 %v1205_v0 }
  0x7a   : > { %932 = vmatpush3.bf16.msra.mxu1 %v931_v35 }
  0x7b   : > { %933 = vmatprep.subr.bf16.mxu1 %v1205_v0 }
  0x7c   : > { %914 = vmatpush3.bf16.msra.mxu0 %v913_v16 }
  0x7d   : > { %915 = vmatprep.subr.bf16.mxu0 %v1205_v0 }
  0x7e   : > { %935 = vmatpush3.bf16.msra.mxu1 %v934_v38 }
  0x7f   : > { %936 = vmatprep.subr.bf16.mxu1 %v1205_v0 }
  0x80   : > { %917 = vmatpush3.bf16.msra.mxu0 %v916_v19 }
  0x81   : > { %918 = vmatprep.subr.bf16.mxu0 %v1205_v0 }
  0x82   : > { %938 = vmatpush3.bf16.msra.mxu1 %v937_v41 }
  0x83   : > { %939 = vmatprep.subr.bf16.mxu1 %v1205_v0 }
  0x84   : > { %920 = vmatpush3.bf16.msra.mxu0 %v919_v22 }
  0x85   : > { %921 = vmatprep.subr.bf16.mxu0 %v1205_v0 }
  0x86   : > { %941 = vmatpush3.bf16.msra.mxu1 %v940_v44 }
  0x87   : > { %942 = vmatprep.subr.bf16.mxu1 %v1205_v0 }
  0x88   : > { %923 = vmatpush3.bf16.msra.mxu0 %v922_v25 }
  0x8a   : > { %944 = vmatpush3.bf16.msra.mxu1 %v943_v47 }
  0x8b   : > { %863 = vmatmul.mubr.f32.vlgmr.msra.gmra.mrb[0].mxu0 %v1440_v26  ;;  %945 = vmatprep.subr.bf16.mxu1 %v1205_v0 }
  0x8e   : > { %947 = vmatpush3.bf16.msra.mxu1 %v946_v50 }
 0x15e   : > { %v359_v52 = vpop.f32.mrb[0].mxu0 }
 0x15f   : > { %v1453_v53 = vadd.f32 %v782_v51, %v359_v52  ;;  %v864_v54 = vpop.f32.mrb[1].mxu0 }
 0x161   : > { %v366_v55 = vand.u32 2139095040, %v1453_v53  ;;  %v363_v59 = vand.u32 2147483647, %v1453_v53  ;;  %vm365_vm8 = vcmp.lt.s32.totalorder %v1453_v53, 0  ;;  %vm455_vm13 = vweird.f32 %v1453_v53 }
 0x163   : > { %v367_v56 = vshrl.u32 %v366_v55, 23  ;;  %v370_v62 = vand.u32 8388607, %v363_v59  ;;  %vm364_vm9 = vcmp.le.f32.partialorder %v363_v59, 0.7853982 }
 0x165   : > { %v783_v57 = vadd.s32 4294967169, %v367_v56  ;;  %v371_v17 = vor.u32 8388608, %v370_v62 }
 0x167   : > { %v373_v58 = vadd.s32 1, %v783_v57  ;;  %v411_v32 = vshll.u32 %v371_v17, 8 }
 0x169   : > { %vm374_vm1 = vcmp.gt.s32.totalorder %v373_v58, 0 }
 0x16a   : > { %v375_v60 = vsel %vm374_vm1, %v373_v58, 0 }
 0x16b   : > { %v377_v61 = vand.u32 31, %v375_v60  ;;  %v376_v0 = vshrl.u32 %v375_v60, 5 }
 0x16d   : > { %v378_v63 = vsub.s32 32, %v377_v61  ;;  %v380_v2 = vshll.u32 %v1208_v1, %v377_v61  ;;  %v383_v4 = vshll.u32 %v1209_v3, %v377_v61  ;;  %v386_v8 = vshll.u32 %v1210_v6, %v377_v61 }
 0x16e   : > { %v389_v11 = vshll.u32 %v1211_v9, %v377_v61  ;;  %v392_v14 = vshll.u32 %v1212_v12, %v377_v61  ;;  %vm395_vm2 = vcmp.lt.s32.totalorder %v376_v0, 1  ;;  %vm398_vm3 = vcmp.lt.s32.totalorder %v376_v0, 4 }
 0x16f   : > { %v381_v5 = vshrl.u32 %v1209_v3, %v378_v63  ;;  %v384_v7 = vshrl.u32 %v1210_v6, %v378_v63  ;;  %v387_v10 = vshrl.u32 %v1211_v9, %v378_v63  ;;  %v390_v13 = vshrl.u32 %v1212_v12, %v378_v63 }
 0x170   : > { %v393_v16 = vshrl.u32 %v1213_v15, %v378_v63  ;;  %v379_v27 = vshrl.u32 %v1208_v1, %v378_v63  ;;  %vm397_vm4 = vcmp.lt.s32.totalorder %v376_v0, 3  ;;  %vm396_vm5 = vcmp.lt.s32.totalorder %v376_v0, 2 }
 0x171   : > { %v382_v18 = vor.u32 %v381_v5, %v380_v2  ;;  %v385_v19 = vor.u32 %v384_v7, %v383_v4  ;;  %v388_v20 = vor.u32 %v387_v10, %v386_v8  ;;  %v391_v21 = vor.u32 %v390_v13, %v389_v11 }
 0x172   : > { %v394_v22 = vor.u32 %v393_v16, %v392_v14 }
 0x173   : > { %v400_v23 = vsel %vm398_vm3, %v388_v20, 2102212464  ;;  %v403_v24 = vsel %vm395_vm2, %v382_v18, %v385_v19  ;;  %v407_v25 = vsel %vm395_vm2, %v385_v19, %v388_v20  ;;  %v404_v28 = vsel %vm398_vm3, %v391_v21, 920167782 }
 0x174   : > { %v408_v29 = vsel %vm398_vm3, %v394_v22, 1326507024  ;;  %v405_v30 = vsel %vm397_vm4, %v388_v20, %v404_v28  ;;  %v399_v33 = vsel %vm395_vm2, %v379_v27, %v382_v18  ;;  %v401_v34 = vsel %vm397_vm4, %v385_v19, %v400_v23  ;;  %v787_v27 = vld [vmem:[%s1575_s4] ss:$0 sm:$0xff] }
 0x175   : > { %v409_v31 = vsel %vm397_vm4, %v391_v21, %v408_v29  ;;  %v406_v35 = vsel %vm396_vm5, %v403_v24, %v405_v30  ;;  %v402_v41 = vsel %vm396_vm5, %v399_v33, %v401_v34 }
 0x176   : > { %v410_v36 = vsel %vm396_vm5, %v407_v25, %v409_v31  ;;  %v1473_v39 = vmul.u32.u64.low %v411_v32, %v406_v35  ;;  %v1474_v40 = vmul.u32.u64.high %v411_v32, %v406_v35, %v1473_v39  ;;  %v418_v43 = vmul.u32 %v411_v32, %v402_v41 }
 0x177   : > { %v1470_v37 = vmul.u32.u64.low %v411_v32, %v410_v36  ;;  %v1471_v38 = vmul.u32.u64.high %v411_v32, %v410_v36, %v1470_v37 }
 0x178   : > { %v421_v42 = vadd.s32 1, %v1474_v40 }
 0x179   : > { %vm420_vm6 = vc.u32 %v1471_v38, %v1473_v39  ;;  %v419_v56 = vadd.s32 %v1473_v39, %v1471_v38 }
 0x17a   : > { %v422_v44 = vsel %vm420_vm6, %v421_v42, %v1474_v40 }
 0x17b   : > { %v423_v45 = vadd.s32 %v422_v44, %v418_v43 }
 0x17d   : > { %v424_v46 = vadd.s32 536870912, %v423_v45 }
 0x17f   : > { %v425_v47 = vshrl.u32 %v424_v46, 30 }
 0x181   : > { %v426_v48 = vshll.u32 %v425_v47, 30  ;;  %v449_v8 = vsub.s32 4, %v425_v47 }
 0x183   : > { %v427_v49 = vsub.s32 %v423_v45, %v426_v48  ;;  %v450_v13 = vsel %vm365_vm8, %v449_v8, %v425_v47 }
 0x184   : > { %v452_v16 = vsel %vm364_vm9, 0, %v450_v13 }
 0x185   : > { %v429_v50 = vsub.s32 0, %v427_v49  ;;  %v456_v17 = vadd.s32 3, %v452_v16 }
 0x187   : > { %v784_v51 = vmin.u32 %v429_v50, %v427_v49  ;;  %v457_v18 = vand.u32 3, %v456_v17 }
 0x189   : > { %v431_v52 = vclz %v784_v51  ;;  %vm462_vm10 = vcmp.eq.s32.totalorder %v457_v18, 2  ;;  %vm459_vm11 = vcmp.eq.s32.totalorder %v457_v18, 0  ;;  %vm458_vm12 = vcmp.lt.s32.totalorder %v457_v18, 2 }
 0x18b   : > { %v785_v54 = vadd.s32 4294967294, %v431_v52 }
 0x18d   : > { %vm786_vm7 = vcmp.lt.s32.totalorder %v785_v54, 0 }
 0x18e   : > { %v434_v55 = vsel %vm786_vm7, 0, %v785_v54 }
 0x18f   : > { %v435_v57 = vsub.s32 32, %v434_v55  ;;  %v439_v58 = vsub.s32 4294967266, %v434_v55  ;;  %v436_v60 = vshll.u32 %v427_v49, %v434_v55 }
 0x191   : > { %v437_v61 = vshrl.u32 %v419_v56, %v435_v57  ;;  %v440_v62 = vadd.s32 127, %v439_v58 }
 0x193   : > { %v438_v63 = vor.u32 %v437_v61, %v436_v60  ;;  %v441_v0 = vshll.u32 %v440_v62, 23 }
 0x195   : > { %v442_v2 = vor.u32 4788187, %v441_v0  ;;  %v445_v5 = vcvt.s32.f32 %v438_v63 }
 0x197   : > { %v443_v4 = vand.u32 2147483647, %v442_v2 }
 0x199   : > { %v446_v7 = vmul.f32 %v445_v5, %v443_v4 }
 0x19b   : > { %v447_v10 = vxor.u32 2147483648, %v446_v7 }
 0x19d   : > { %v448_v11 = vsel %vm365_vm8, %v447_v10, %v446_v7 }
 0x19e   : > { %v451_v14 = vsel %vm364_vm9, %v1453_v53, %v448_v11 }
 0x19f   : > { %1034 = vcosq.f32 %v451_v14 }
 0x1a0   : > { %1036 = vsinq.f32 %v451_v14 }
 0x1a9   : > { %v1035_v19 = vpop.eup %1034 }
 0x1aa   : > { %v1037_v20 = vpop.eup %1036  ;;  %v463_v21 = vxor.u32 2147483648, %v1035_v19 }
 0x1ab   : > { %v460_v22 = vxor.u32 2147483648, %v1037_v20 }
 0x1ac   : > { %v464_v23 = vsel %vm462_vm10, %v463_v21, %v1037_v20 }
 0x1ad   : > { %v461_v24 = vsel %vm459_vm11, %v1035_v19, %v460_v22 }
 0x1ae   : > { %v465_v59 = vsel %vm458_vm12, %v461_v24, %v464_v23 }
 0x1af   : > { %v466_v25 = vsel %vm455_vm13, nan, %v465_v59 }
 0x1b0   : > { %898 = vmatmul.mubr.f32.vlgmr.msra.gmra.mrb[0].mxu1 %v466_v25 }
 0x283   : > { %v556_v28 = vpop.f32.mrb[0].mxu1 }
 0x284   : > { %v1488_v29 = vadd.f32 %v787_v27, %v556_v28  ;;  %v899_v30 = vpop.f32.mrb[1].mxu1 }
 0x286   : > { %v563_v31 = vand.u32 2139095040, %v1488_v29  ;;  %v560_v35 = vand.u32 2147483647, %v1488_v29  ;;  %vm562_vm5 = vcmp.lt.s32.totalorder %v1488_v29, 0  ;;  %vm652_vm10 = vweird.f32 %v1488_v29 }
 0x288   : > { %v564_v32 = vshrl.u32 %v563_v31, 23  ;;  %v567_v37 = vand.u32 8388607, %v560_v35  ;;  %vm561_vm6 = vcmp.le.f32.partialorder %v560_v35, 0.7853982 }
 0x28a   : > { %v788_v33 = vadd.s32 4294967169, %v564_v32  ;;  %v568_v50 = vor.u32 8388608, %v567_v37 }
 0x28c   : > { %v570_v34 = vadd.s32 1, %v788_v33 }
 0x28e   : > { %vm571_vm14 = vcmp.gt.s32.totalorder %v570_v34, 0 }
 0x28f   : > { %v572_v53 = vsel %vm571_vm14, %v570_v34, 0 }
 0x290   : > { %v574_v36 = vand.u32 31, %v572_v53  ;;  %v573_v39 = vshrl.u32 %v572_v53, 5 }
 0x292   : > { %v575_v38 = vsub.s32 32, %v574_v36  ;;  %v577_v40 = vshll.u32 %v1208_v1, %v574_v36  ;;  %v580_v41 = vshll.u32 %v1209_v3, %v574_v36  ;;  %v583_v44 = vshll.u32 %v1210_v6, %v574_v36 }
 0x293   : > { %v586_v46 = vshll.u32 %v1211_v9, %v574_v36  ;;  %v589_v48 = vshll.u32 %v1212_v12, %v574_v36  ;;  %vm592_vm15 = vcmp.lt.s32.totalorder %v573_v39, 1  ;;  %vm595_vm0 = vcmp.lt.s32.totalorder %v573_v39, 4 }
 0x294   : > { %v578_v42 = vshrl.u32 %v1209_v3, %v575_v38  ;;  %v581_v43 = vshrl.u32 %v1210_v6, %v575_v38  ;;  %v584_v45 = vshrl.u32 %v1211_v9, %v575_v38  ;;  %v587_v47 = vshrl.u32 %v1212_v12, %v575_v38 }
 0x295   : > { %v590_v49 = vshrl.u32 %v1213_v15, %v575_v38  ;;  %v576_v58 = vshrl.u32 %v1208_v1, %v575_v38  ;;  %vm594_vm1 = vcmp.lt.s32.totalorder %v573_v39, 3  ;;  %vm593_vm2 = vcmp.lt.s32.totalorder %v573_v39, 2 }
 0x296   : > { %v579_v51 = vor.u32 %v578_v42, %v577_v40  ;;  %v582_v52 = vor.u32 %v581_v43, %v580_v41  ;;  %v585_v54 = vor.u32 %v584_v45, %v583_v44  ;;  %v588_v55 = vor.u32 %v587_v47, %v586_v46 }
 0x297   : > { %v591_v3 = vor.u32 %v590_v49, %v589_v48  ;;  %v608_v15 = vshll.u32 %v568_v50, 8 }
 0x298   : > { %v597_v56 = vsel %vm595_vm0, %v585_v54, 2102212464  ;;  %v600_v6 = vsel %vm592_vm15, %v579_v51, %v582_v52  ;;  %v604_v57 = vsel %vm592_vm15, %v582_v52, %v585_v54  ;;  %v601_v9 = vsel %vm595_vm0, %v588_v55, 920167782 }
 0x299   : > { %v605_v60 = vsel %vm595_vm0, %v591_v3, 1326507024  ;;  %v602_v12 = vsel %vm594_vm1, %v585_v54, %v601_v9  ;;  %v596_v62 = vsel %vm592_vm15, %v576_v58, %v579_v51  ;;  %v598_v63 = vsel %vm594_vm1, %v582_v52, %v597_v56 }
 0x29a   : > { %v606_v61 = vsel %vm594_vm1, %v588_v55, %v605_v60  ;;  %v603_v0 = vsel %vm593_vm2, %v600_v6, %v602_v12  ;;  %v599_v10 = vsel %vm593_vm2, %v596_v62, %v598_v63 }
 0x29b   : > { %v607_v2 = vsel %vm593_vm2, %v604_v57, %v606_v61  ;;  %v1508_v7 = vmul.u32.u64.low %v608_v15, %v603_v0  ;;  %v1509_v8 = vmul.u32.u64.high %v608_v15, %v603_v0, %v1508_v7  ;;  %v615_v11 = vmul.u32 %v608_v15, %v599_v10 }
 0x29c   : > { %v1505_v4 = vmul.u32.u64.low %v608_v15, %v607_v2  ;;  %v1506_v5 = vmul.u32.u64.high %v608_v15, %v607_v2, %v1505_v4 }
 0x29d   : > { %v618_v1 = vadd.s32 1, %v1509_v8 }
 0x29e   : > { %vm617_vm3 = vc.u32 %v1506_v5, %v1508_v7  ;;  %v616_v59 = vadd.s32 %v1508_v7, %v1506_v5 }
 0x29f   : > { %v619_v13 = vsel %vm617_vm3, %v618_v1, %v1509_v8 }
 0x2a0   : > { %v620_v14 = vadd.s32 %v619_v13, %v615_v11 }
 0x2a2   : > { %v621_v16 = vadd.s32 536870912, %v620_v14 }
 0x2a4   : > { %v622_v17 = vshrl.u32 %v621_v16, 30 }
 0x2a6   : > { %v623_v18 = vshll.u32 %v622_v17, 30  ;;  %v646_v38 = vsub.s32 4, %v622_v17 }
 0x2a8   : > { %v624_v19 = vsub.s32 %v620_v14, %v623_v18  ;;  %v647_v41 = vsel %vm562_vm5, %v646_v38, %v622_v17 }
 0x2a9   : > { %v649_v43 = vsel %vm561_vm6, 0, %v647_v41 }
 0x2aa   : > { %v626_v20 = vsub.s32 0, %v624_v19  ;;  %v653_v44 = vadd.s32 3, %v649_v43 }
 0x2ac   : > { %v789_v21 = vmin.u32 %v626_v20, %v624_v19  ;;  %v654_v45 = vand.u32 3, %v653_v44 }
 0x2ae   : > { %v628_v22 = vclz %v789_v21  ;;  %vm659_vm7 = vcmp.eq.s32.totalorder %v654_v45, 2  ;;  %vm656_vm8 = vcmp.eq.s32.totalorder %v654_v45, 0  ;;  %vm655_vm9 = vcmp.lt.s32.totalorder %v654_v45, 2 }
 0x2b0   : > { %v790_v23 = vadd.s32 4294967294, %v628_v22 }
 0x2b2   : > { %vm791_vm4 = vcmp.lt.s32.totalorder %v790_v23, 0 }
 0x2b3   : > { %v631_v24 = vsel %vm791_vm4, 0, %v790_v23 }
 0x2b4   : > { %v632_v25 = vsub.s32 32, %v631_v24  ;;  %v636_v27 = vsub.s32 4294967266, %v631_v24  ;;  %v633_v28 = vshll.u32 %v624_v19, %v631_v24 }
 0x2b6   : > { %v634_v30 = vshrl.u32 %v616_v59, %v632_v25  ;;  %v637_v31 = vadd.s32 127, %v636_v27 }
 0x2b8   : > { %v635_v32 = vor.u32 %v634_v30, %v633_v28  ;;  %v638_v33 = vshll.u32 %v637_v31, 23 }
 0x2ba   : > { %v639_v34 = vor.u32 4788187, %v638_v33  ;;  %v642_v36 = vcvt.s32.f32 %v635_v32 }
 0x2bc   : > { %v640_v53 = vand.u32 2147483647, %v639_v34 }
 0x2be   : > { %v643_v37 = vmul.f32 %v642_v36, %v640_v53 }
 0x2c0   : > { %v644_v39 = vxor.u32 2147483648, %v643_v37 }
 0x2c2   : > { %v645_v40 = vsel %vm562_vm5, %v644_v39, %v643_v37 }
 0x2c3   : > { %v648_v42 = vsel %vm561_vm6, %v1488_v29, %v645_v40 }
 0x2c4   : > { %1038 = vcosq.f32 %v648_v42 }
 0x2c5   : > { %1040 = vsinq.f32 %v648_v42 }
 0x2ce   : > { %v1039_v46 = vpop.eup %1038 }
 0x2cf   : > { %v1041_v47 = vpop.eup %1040  ;;  %v660_v48 = vxor.u32 2147483648, %v1039_v46 }
 0x2d0   : > { %v657_v49 = vxor.u32 2147483648, %v1041_v47 }
 0x2d1   : > { %v661_v50 = vsel %vm659_vm7, %v660_v48, %v1041_v47 }
 0x2d2   : > { %v658_v35 = vsel %vm656_vm8, %v1039_v46, %v657_v49 }
 0x2d3   : > { %v662_v51 = vsel %vm655_vm9, %v658_v35, %v661_v50 }
 0x2d4   : > { %v663_v52 = vsel %vm652_vm10, nan, %v662_v51 }
 0x2d5   : > { %v664_v54 = vadd.f32 %v663_v52, %v1440_v26 }
 0x2d7   : > { %v665_v55 = vmul.f32 0.5, %v664_v54 }
 0x2d9   : > { %666 = vst [vmem:[%s268_s28] sm:$0xff] %v665_v55 }
 0x2da   : > { %1141 = shalt.err (!%p1138_p2)
}
 0x2db   : > { %s1142_s12 = scalar_lea.hbm %s1527_s15, 128  ;;  %s1146_s26 = scalar_lea.hbm %s1576_s5, 256 }
 0x2dc   : > { %p1143_p13 = scmp.ne.s32.totalorder %s1527_s15, %s1142_s12  ;;  %p1147_p4 = scmp.lt.u32.totalorder %s1527_s15, %s1576_s5 }
 0x2dd   : > { %p1148_p5 = scmp.lt.u32.totalorder %s1146_s26, %s1142_s12  ;;  %p1150_p11 = scmp.lt.u32.totalorder %s1142_s12, %s1527_s15 }
 0x2de   : > { %p1144_p6 = pnand %p1143_p13, %p1590_p0 }
 0x2df   : > { %p1149_p8 = por %p1148_p5, %p1147_p4 }
 0x2e0   : > { %p1145_p10 = pneg %p1144_p6 }
 0x2e1   : > { %p1151_p1 = por %p1150_p11, %p1149_p8 }
 0x2e3   : > { %p1152_p3 = pnand %p1151_p1, %p1145_p10 }
 0x2e5   : > { %1155 = shalt.err (!%p1152_p3)
}
 0x2e6   : > { %966 = dma.vmem_to_hbm [thread:$0]  (%p1590_p0), %s1529_s7, 128, %s1527_s15, %s668_s16  }
 0x2e7 PF: > { %s693_s11 = sand.u32 1, %s1186_s18   ;;  %p1591_p7 = scmp.ne.s32.totalorder %s1581_s25, 0 }
 0x2e8   : > { %p1592_p9 = scmp.ge.s32.totalorder %s1198_s21, 2  ;;  %s694_s28 = scalar_lea.sflag [#allocation4], %s693_s11 }
 0x2ea   : > { %p980_p12 = pnand %p1592_p9, %p1591_p7 }
 0x2ec   : > { %1181 = dma.done.wait (!%p980_p12), %s694_s28, 128  }
 0x2ed   : > { %1183 = vsyncadd (!%p980_p12), %s694_s28, 4294967168  ;;  %p19_p2 = scmp.ge.s32.totalorder %s1355_s14, 4   ;;  %s1593_s18 = smov %s1190_s19 }
 0x2ee   : > { %s1594_s19 = smov %s1194_s20  ;;  %s1595_s20 = smov %s1371_s27 }
 0x2ef   : > { %s1596_s21 = smov %s1355_s14  ;;  %21 = sbr.rel (!%p19_p2) target bundleno = 6 (0x6), region = 93 }
 0x2f6   :  { %699 = vsyncpa [#allocation3], 1 }
 0x2f7   :  { %701 = vsyncpa [#allocation3 + $0x1], 1 }
 0x2f8   :  { %702 = vsyncpa [#allocation6], 1 }
 0x2f9   :  { %703 = vsyncpa [#allocation4], 1 }
 0x2fa   :  { %705 = vsyncpa [#allocation4 + $0x1], 1 }

// kernel: tpu_custom_call.1
= control target key start
LH: loop header
LB: loop body
LE: loop exit
PB: predicated region body
PF: predicated region fallthrough
CT: control target
= control target key end

     0   :  { %10 = vsyncpa [#allocation3], 0  ;;  %s1571_s0 = inlined_call_operand.hbm [shape: f32[16,128], index: 0, kind: input, shape index: {}]   ;;  %s1572_s1 = inlined_call_operand.hbm [shape: f32[128,128], index: 1, kind: input, shape index: {}]   ;;  %s1573_s2 = inlined_call_operand.vmem [shape: f32[1,128], index: 2, kind: input, shape index: {}]   ;;  %s1574_s3 = inlined_call_operand.hbm [shape: f32[128,128], index: 3, kind: input, shape index: {}]   ;;  %s1575_s4 = inlined_call_operand.vmem [shape: f32[1,128], index: 4, kind: input, shape index: {}]   ;;  %s1576_s5 = inlined_call_operand.hbm [shape: f32[16,128], index: 5, kind: output, shape index: {}]  }
   0x1   :  { %12 = vsyncpa [#allocation3 + $0x1], 0 }
   0x2   :  { %13 = vsyncpa [#allocation6], 0 }
   0x3   :  { %14 = vsyncpa [#allocation4], 0 }
   0x4   :  { %16 = vsyncpa [#allocation4 + $0x1], 0  ;;  %s1245_s18 = smov 0   ;;  %s1247_s19 = smov 0  }
   0x5   :  { %s1249_s20 = smov 0   ;;  %s1251_s21 = smov 0  }
   0x6 LB: > { %s1266_s22 = sadd.s32 4294967295, %s1198_s21   ;;  %s770_s23 = sadd.s32 4294967294, %s1198_s21   ;;  %s1198_s21 = sphi %s1251_s21, %s1596_s21   ;;  %s1194_s20 = sphi %s1249_s20, %s1595_s20   ;;  %s1190_s19 = sphi %s1247_s19, %s1594_s19   ;;  %s1186_s18 = sphi %s1245_s18, %s1593_s18  }
   0x7   : > { %p42_p0 = scmp.ne.s32.totalorder %s1190_s19, %s1186_s18  ;;  %p1577_p1 = scmp.eq.s32.totalorder %s1266_s22, 0 }
   0x8   : > { %p156_p3 = scmp.eq.s32.totalorder %s770_s23, 1  ;;  %p771_p5 = scmp.ge.s32.totalorder %s1198_s21, 1 }
   0x9   : > { %p1275_p4 = por %p1577_p1, %p42_p0  ;;  %p163_p7 = scmp.lt.s32.totalorder %s1198_s21, 3 }
   0xa   : > { %p1280_p6 = por %p156_p3, %p42_p0  ;;  %s1200_s27 = smov [#allocation5]  }
   0xb   : > { %s1580_s24 = scalar_select %p1275_p4, 1, 0 }
   0xc   : > { %s1581_s25 = scalar_select %p1280_p6, 1, 0 }
   0xd   : > { %p1285_p8 = pnand %p771_p5, %p163_p7  ;;  %s175_s28 = sshll.u32 %s1200_s27, 4  ;;  %s1289_s28 = int_to_ptr.vmem [resolvable:$true] %s175_s28 }
   0xe   : > { %s1201_s30 = smov [#allocation7]   ;;  %s1042_s9 = scalar_lea.hbm %s1572_s1, 2048 }
   0xf   : > { %p968_p9 = pneg %p1285_p8  ;;  %s191_s6 = sshll.u32 %s1201_s30, 4  ;;  %s1300_s6 = int_to_ptr.vmem [resolvable:$true] %s191_s6 }
  0x10   : > { %p1043_p12 = scmp.ne.s32.totalorder %s1572_s1, %s1042_s9  ;;  %p1049_p5 = scmp.lt.u32.totalorder %s1042_s9, %s1572_s1 }
  0x11   : > { %p1296_p11 = pnand %p968_p9, %p1577_p1 }
  0x13   : > { %p1044_p13 = pneg %p1296_p11 }
  0x15   : > { %p1045_p0 = pnand %p1044_p13, %p1043_p12 }
  0x17   : > { %p1046_p3 = pneg %p1045_p0 }
  0x19   : > { %p1051_p7 = pnand %p1049_p5, %p1046_p3 }
  0x1b   : > { %1054 = shalt.err (!%p1051_p7)
}
  0x1c   : > { %s1055_s14 = scalar_lea.vmem %s1289_s28, 2048  ;;  %p1063_p2 = scmp.lt.s32.totalorder %s1289_s28, %s1289_s28 }
  0x1d   : > { %p1056_p9 = scmp.ne.s32.totalorder %s1289_s28, %s1055_s14  ;;  %p1064_p12 = scmp.lt.s32.totalorder %s1055_s14, %s1055_s14 }
  0x1f   : > { %p1058_p10 = pnand %p1056_p9, %p1044_p13  ;;  %p1065_p0 = por %p1064_p12, %p1063_p2 }
  0x21   : > { %p1059_p1 = pneg %p1058_p10 }
  0x23   : > { %p1066_p6 = pnand %p1065_p0, %p1059_p1 }
  0x25   : > { %1069 = shalt.err (!%p1066_p6)
}
  0x26   : > { %s1202_s15 = smov 128   ;;  %s1203_s16 = smov 8  }
  0x27   : > { %971 = dma.hbm_to_vmem [thread:$0]  (!%p1296_p11), %s1572_s1, 2048, %s1289_s28, [#allocation6], %s1202_s15, %s1202_s15, %s1203_s16  }
  0x28   : > { %s1070_s7 = scalar_lea.hbm %s1574_s3, 2048 }
  0x29   : > { %p1071_p2 = scmp.ne.s32.totalorder %s1574_s3, %s1070_s7  ;;  %p1077_p10 = scmp.lt.u32.totalorder %s1070_s7, %s1574_s3 }
  0x2b   : > { %p1073_p1 = pnand %p1071_p2, %p1044_p13 }
  0x2d   : > { %p1074_p6 = pneg %p1073_p1 }
  0x2f   : > { %p1079_p3 = pnand %p1077_p10, %p1074_p6 }
  0x31   : > { %1082 = shalt.err (!%p1079_p3)
}
  0x32   : > { %s1083_s28 = scalar_lea.vmem %s1300_s6, 2048  ;;  %p1091_p12 = scmp.lt.s32.totalorder %s1300_s6, %s1300_s6 }
  0x33   : > { %p1084_p5 = scmp.ne.s32.totalorder %s1300_s6, %s1083_s28  ;;  %p1092_p0 = scmp.lt.s32.totalorder %s1083_s28, %s1083_s28 }
  0x35   : > { %p1086_p7 = pnand %p1084_p5, %p1044_p13  ;;  %p1093_p2 = por %p1092_p0, %p1091_p12 }
  0x37   : > { %p1087_p9 = pneg %p1086_p7 }
  0x39   : > { %p1094_p1 = pnand %p1093_p2, %p1087_p9 }
  0x3b   : > { %1097 = shalt.err (!%p1094_p1)
}
  0x3c   : > { %974 = dma.hbm_to_vmem [thread:$0]  (!%p1296_p11), %s1574_s3, 2048, %s1300_s6, [#allocation6], %s1202_s15, %s1202_s15, %s1203_s16  }
  0x3d   : > { %s1355_s14 = sadd.s32 1, %s1198_s21   ;;  %s29_s29 = sadd.s32 1, %s1194_s20 }
  0x3e   : > { %s26_s17 = ssub.s32 %s1198_s21, %s1355_s14  ;;  %p36_p13 = scmp.ne.s32.totalorder %s1194_s20, %s1190_s19 }
  0x3f   : > { %p27_p6 = scmp.eq.s32.totalorder %s26_s17, 0  ;;  %p37_p10 = scmp.eq.s32.totalorder %s1198_s21, 0 }
  0x40   : > { %p1584_p3 = scmp.eq.s32.totalorder %s1266_s22, 1  ;;  %p985_p7 = scmp.lt.s32.totalorder %s1198_s21, 2 }
  0x41   : > { %s1371_s27 = scalar_select %p27_p6, %s1194_s20, %s29_s29  }
  0x42   : > { %p1365_p5 = por %p1584_p3, %p36_p13  ;;  %p38_p9 = por %p37_p10, %p36_p13 }
  0x43   : > { %s208_s30 = sand.u32 1, %s1194_s20   ;;  %s776_s6 = sshll.u32 %s1198_s21, 7 }
  0x44   : > { %s1585_s23 = scalar_select %p1365_p5, 1, 0 }
  0x45   : > { %s775_s7 = sshll.u32 %s208_s30, 3  ;;  %s1378_s8 = scalar_lea.hbm %s1571_s0, %s776_s6 }
  0x46   : > { %s212_s9 = scalar_lea.vmem [#allocation2], %s775_s7  ;;  %p1382_p11 = pnand %p985_p7, %p38_p9 }
  0x47   : > { %s219_s10 = sshll.u32 %s212_s9, 4  ;;  %s209_s28 = scalar_lea.sflag [#allocation3], %s208_s30  ;;  %s1380_s10 = int_to_ptr.vmem [resolvable:$true] %s219_s10 }
  0x48   : > { %s1098_s12 = scalar_lea.hbm %s1378_s8, 128  ;;  %p1100_p0 = pneg %p1382_p11 }
  0x49   : > { %p1099_p12 = scmp.ne.s32.totalorder %s1378_s8, %s1098_s12  ;;  %s1103_s17 = scalar_lea.hbm %s1571_s0, 256 }
  0x4a   : > { %p1104_p13 = scmp.lt.u32.totalorder %s1378_s8, %s1571_s0  ;;  %p1105_p6 = scmp.lt.u32.totalorder %s1103_s17, %s1098_s12 }
  0x4b   : > { %p1101_p2 = pnand %p1100_p0, %p1099_p12  ;;  %p1107_p3 = scmp.lt.u32.totalorder %s1098_s12, %s1378_s8 }
  0x4c   : > { %p1106_p10 = por %p1105_p6, %p1104_p13 }
  0x4d   : > { %p1102_p1 = pneg %p1101_p2 }
  0x4e   : > { %p1108_p7 = por %p1107_p3, %p1106_p10 }
  0x50   : > { %p1109_p9 = pnand %p1108_p7, %p1102_p1 }
  0x52   : > { %1112 = shalt.err (!%p1109_p9)
}
  0x53   : > { %s1113_s30 = scalar_lea.vmem %s1380_s10, 128  ;;  %s1204_s15 = smov [#allocation2]  }
  0x54   : > { %p1114_p12 = scmp.ne.s32.totalorder %s1380_s10, %s1113_s30  ;;  %s1118_s16 = sshll.u32 %s1204_s15, 4  ;;  %s1119_s16 = int_to_ptr.vmem [resolvable:$false] %s1118_s16 }
  0x55   : > { %s1120_s9 = scalar_lea.vmem %s1119_s16, 256  ;;  %p1121_p4 = scmp.lt.s32.totalorder %s1380_s10, %s1119_s16 }
  0x56   : > { %p1116_p2 = pnand %p1114_p12, %p1100_p0  ;;  %p1122_p13 = scmp.lt.s32.totalorder %s1120_s9, %s1113_s30 }
  0x58   : > { %p1117_p5 = pneg %p1116_p2  ;;  %p1123_p6 = por %p1122_p13, %p1121_p4 }
  0x5a   : > { %p1124_p10 = pnand %p1123_p6, %p1117_p5 }
  0x5c   : > { %1127 = shalt.err (!%p1124_p10)
}
  0x5d   : > { %978 = dma.hbm_to_vmem [thread:$0]  (!%p1382_p11), %s1378_s8, 128, %s1380_s10, %s209_s28  }
  0x5e   : > { %228 = sbr.rel (%p1285_p8) target bundleno = 743 (0x2e7), region = 40  ;;  %s1414_s12 = sand.u32 (!%p1285_p8), 1, %s1190_s19  }
  0x5f   : > { %s778_s13 = sshll.u32 (!%p1285_p8), %s1414_s12, 3  ;;  %s231_s29 = scalar_lea.sflag (!%p1285_p8), [#allocation3], %s1414_s12 }
  0x60   : > { %s1420_s17 = scalar_lea.vmem (!%p1285_p8), [#allocation2], %s778_s13  ;;  %p1587_p4 = scmp.ne.s32.totalorder (!%p1285_p8), %s1580_s24, 0 }
  0x65   : > { %1173 = dma.done.wait (%p1587_p4), %s231_s29, 128  }
  0x66   : > { %1175 = vsyncadd (%p1587_p4), %s231_s29, 4294967168  ;;  %p1588_p5 = scmp.eq.s32.totalorder %s1266_s22, 0 }
  0x68   : > { %1177 = dma.done.wait (%p1588_p5), [#allocation6], 4096   ;;  %p1589_p8 = pmov %p1588_p5 }
  0x69   : > { %v1205_v0 = vmov 0.0|0.0   ;;  %vm1206_vm0 = vmmov 0   ;;  %v1207_v1 = vmov 0.0   ;;  %v270_v2 = vld [vmem:[#allocation5] sm:$0xff]  ;;  %v271_v3 = vld [vmem:[#allocation5 + $0x8] sm:$0xff]  ;;  %v272_v4 = vld [vmem:[#allocation5 + $0x10] sm:$0xff] }
  0x6a   : > { %1179 = vsyncadd (%p1589_p8), [#allocation6], 4294963200  ;;  %900 = vmatprep.subr.bf16.mxu0 %v1205_v0  ;;  %862 = vmatprep.mubr.msk.f32.mxu0 %vm1206_vm0, %v1207_v1  ;;  %v901_v5 = vpack.c.bf16 %v271_v3, %v270_v2  ;;  %v273_v6 = vld [vmem:[#allocation5 + $0x18] sm:$0xff]  ;;  %v274_v8 = vld [vmem:[#allocation5 + $0x20] sm:$0xff]  ;;  %v1209_v3 = vmov 2475754826  }
  0x6b   : > { %924 = vmatprep.subr.bf16.mxu1 %v1205_v0  ;;  %897 = vmatprep.mubr.msk.f32.mxu1 %vm1206_vm0, %v1207_v1  ;;  %v904_v7 = vpack.c.bf16 %v273_v6, %v272_v4  ;;  %v275_v9 = vld [vmem:[#allocation5 + $0x28] sm:$0xff]  ;;  %v276_v11 = vld [vmem:[#allocation5 + $0x30] sm:$0xff]  ;;  %v277_v12 = vld [vmem:[#allocation5 + $0x38] sm:$0xff]  ;;  %v1208_v1 = vmov 683565275   ;;  %s793_s11 = sshll.u32 %s1266_s22, 7 }
  0x6c   : > { %902 = vmatpush3.bf16.msra.mxu0 %v901_v5  ;;  %v907_v10 = vpack.c.bf16 %v275_v9, %v274_v8  ;;  %v910_v13 = vpack.c.bf16 %v277_v12, %v276_v11  ;;  %v278_v14 = vld [vmem:[#allocation5 + $0x40] sm:$0xff]  ;;  %v279_v15 = vld [vmem:[#allocation5 + $0x48] sm:$0xff]  ;;  %v280_v17 = vld [vmem:[#allocation5 + $0x50] sm:$0xff]  ;;  %v1210_v6 = vmov 2131351028   ;;  %s268_s28 = scalar_lea.vmem [#allocation8], %s778_s13  ;;  %s1527_s15 = scalar_lea.hbm %s1576_s5, %s793_s11 }
  0x6d   : > { %903 = vmatprep.subr.bf16.mxu0 %v1205_v0  ;;  %v913_v16 = vpack.c.bf16 %v279_v15, %v278_v14  ;;  %v281_v18 = vld [vmem:[#allocation5 + $0x58] sm:$0xff]  ;;  %v282_v20 = vld [vmem:[#allocation5 + $0x60] sm:$0xff]  ;;  %v283_v21 = vld [vmem:[#allocation5 + $0x68] sm:$0xff]  ;;  %v1211_v9 = vmov 2102212464   ;;  %s681_s7 = sshll.u32 %s268_s28, 4  ;;  %s1529_s7 = int_to_ptr.vmem [resolvable:$true] %s681_s7 }
  0x6e   : > { %v916_v19 = vpack.c.bf16 %v281_v18, %v280_v17  ;;  %v919_v22 = vpack.c.bf16 %v283_v21, %v282_v20  ;;  %v284_v23 = vld [vmem:[#allocation5 + $0x70] sm:$0xff]  ;;  %v285_v24 = vld [vmem:[#allocation5 + $0x78] sm:$0xff]  ;;  %v467_v27 = vld [vmem:[#allocation7] sm:$0xff]  ;;  %v1212_v12 = vmov 920167782   ;;  %s668_s16 = scalar_lea.sflag [#allocation4], %s1414_s12 }
  0x6f   : > { %v922_v25 = vpack.c.bf16 %v285_v24, %v284_v23  ;;  %v1440_v26 = vld [vmem:[%s1420_s17] sm:$0xff]  ;;  %v468_v28 = vld [vmem:[#allocation7 + $0x8] sm:$0xff]  ;;  %v471_v33 = vld [vmem:[#allocation7 + $0x20] sm:$0xff]  ;;  %v1213_v15 = vmov 1326507024   ;;  %s1128_s9 = scalar_lea.vmem %s1529_s7, 128 }
  0x70   : > { %905 = vmatpush3.bf16.msra.mxu0 %v904_v7  ;;  %v925_v29 = vpack.c.bf16 %v468_v28, %v467_v27  ;;  %v469_v30 = vld [vmem:[#allocation7 + $0x10] sm:$0xff]  ;;  %v470_v31 = vld [vmem:[#allocation7 + $0x18] sm:$0xff]  ;;  %v472_v34 = vld [vmem:[#allocation7 + $0x28] sm:$0xff]  ;;  %p1129_p11 = scmp.ne.s32.totalorder %s1529_s7, %s1128_s9  ;;  %p1590_p0 = scmp.ne.s32.totalorder %s1585_s23, 0 }
  0x71   : > { %906 = vmatprep.subr.bf16.mxu0 %v1205_v0  ;;  %v928_v32 = vpack.c.bf16 %v470_v31, %v469_v30  ;;  %v931_v35 = vpack.c.bf16 %v472_v34, %v471_v33  ;;  %v473_v36 = vld [vmem:[#allocation7 + $0x30] sm:$0xff]  ;;  %v474_v37 = vld [vmem:[#allocation7 + $0x38] sm:$0xff]  ;;  %v475_v39 = vld [vmem:[#allocation7 + $0x40] sm:$0xff]  ;;  %s1214_s22 = smov [#allocation8]  }
  0x72   : > { %926 = vmatpush3.bf16.msra.mxu1 %v925_v29  ;;  %v934_v38 = vpack.c.bf16 %v474_v37, %v473_v36  ;;  %v476_v40 = vld [vmem:[#allocation7 + $0x48] sm:$0xff]  ;;  %v477_v42 = vld [vmem:[#allocation7 + $0x50] sm:$0xff]  ;;  %v478_v43 = vld [vmem:[#allocation7 + $0x58] sm:$0xff]  ;;  %p1130_p1 = pnand %p1129_p11, %p1590_p0  ;;  %s1132_s13 = sshll.u32 %s1214_s22, 4  ;;  %s1133_s13 = int_to_ptr.vmem [resolvable:$false] %s1132_s13 }
  0x73   : > { %927 = vmatprep.subr.bf16.mxu1 %v1205_v0  ;;  %v937_v41 = vpack.c.bf16 %v476_v40, %v475_v39  ;;  %v940_v44 = vpack.c.bf16 %v478_v43, %v477_v42  ;;  %v479_v45 = vld [vmem:[#allocation7 + $0x60] sm:$0xff]  ;;  %v480_v46 = vld [vmem:[#allocation7 + $0x68] sm:$0xff]  ;;  %v481_v48 = vld [vmem:[#allocation7 + $0x70] sm:$0xff]  ;;  %s1134_s29 = scalar_lea.vmem %s1133_s13, 256  ;;  %p1135_p7 = scmp.lt.s32.totalorder %s1529_s7, %s1133_s13 }
  0x74   : > { %908 = vmatpush3.bf16.msra.mxu0 %v907_v10  ;;  %v943_v47 = vpack.c.bf16 %v480_v46, %v479_v45  ;;  %v482_v49 = vld [vmem:[#allocation7 + $0x78] sm:$0xff]  ;;  %v782_v51 = vld [vmem:[%s1573_s2] ss:$0 sm:$0xff]  ;;  %p1131_p3 = pneg %p1130_p1  ;;  %p1136_p9 = scmp.lt.s32.totalorder %s1134_s29, %s1128_s9 }
  0x75   : > { %909 = vmatprep.subr.bf16.mxu0 %v1205_v0  ;;  %v946_v50 = vpack.c.bf16 %v482_v49, %v481_v48 }
  0x76   : > { %929 = vmatpush3.bf16.msra.mxu1 %v928_v32  ;;  %p1137_p12 = por %p1136_p9, %p1135_p7 }
  0x77   : > { %930 = vmatprep.subr.bf16.mxu1 %v1205_v0 }
  0x78   : > { %911 = vmatpush3.bf16.msra.mxu0 %v910_v13  ;;  %p1138_p2 = pnand %p1137_p12, %p1131_p3 }
  0x79   : > { %912 = vmatprep.subr.bf16.mxu0 %v1205_v0 }
  0x7a   : > { %932 = vmatpush3.bf16.msra.mxu1 %v931_v35 }
  0x7b   : > { %933 = vmatprep.subr.bf16.mxu1 %v1205_v0 }
  0x7c   : > { %914 = vmatpush3.bf16.msra.mxu0 %v913_v16 }
  0x7d   : > { %915 = vmatprep.subr.bf16.mxu0 %v1205_v0 }
  0x7e   : > { %935 = vmatpush3.bf16.msra.mxu1 %v934_v38 }
  0x7f   : > { %936 = vmatprep.subr.bf16.mxu1 %v1205_v0 }
  0x80   : > { %917 = vmatpush3.bf16.msra.mxu0 %v916_v19 }
  0x81   : > { %918 = vmatprep.subr.bf16.mxu0 %v1205_v0 }
  0x82   : > { %938 = vmatpush3.bf16.msra.mxu1 %v937_v41 }
  0x83   : > { %939 = vmatprep.subr.bf16.mxu1 %v1205_v0 }
  0x84   : > { %920 = vmatpush3.bf16.msra.mxu0 %v919_v22 }
  0x85   : > { %921 = vmatprep.subr.bf16.mxu0 %v1205_v0 }
  0x86   : > { %941 = vmatpush3.bf16.msra.mxu1 %v940_v44 }
  0x87   : > { %942 = vmatprep.subr.bf16.mxu1 %v1205_v0 }
  0x88   : > { %923 = vmatpush3.bf16.msra.mxu0 %v922_v25 }
  0x8a   : > { %944 = vmatpush3.bf16.msra.mxu1 %v943_v47 }
  0x8b   : > { %863 = vmatmul.mubr.f32.vlgmr.msra.gmra.mrb[0].mxu0 %v1440_v26  ;;  %945 = vmatprep.subr.bf16.mxu1 %v1205_v0 }
  0x8e   : > { %947 = vmatpush3.bf16.msra.mxu1 %v946_v50 }
 0x15e   : > { %v359_v52 = vpop.f32.mrb[0].mxu0 }
 0x15f   : > { %v1453_v53 = vadd.f32 %v782_v51, %v359_v52  ;;  %v864_v54 = vpop.f32.mrb[1].mxu0 }
 0x161   : > { %v366_v55 = vand.u32 2139095040, %v1453_v53  ;;  %v363_v59 = vand.u32 2147483647, %v1453_v53  ;;  %vm365_vm8 = vcmp.lt.s32.totalorder %v1453_v53, 0  ;;  %vm455_vm13 = vweird.f32 %v1453_v53 }
 0x163   : > { %v367_v56 = vshrl.u32 %v366_v55, 23  ;;  %v370_v62 = vand.u32 8388607, %v363_v59  ;;  %vm364_vm9 = vcmp.le.f32.partialorder %v363_v59, 0.7853982 }
 0x165   : > { %v783_v57 = vadd.s32 4294967169, %v367_v56  ;;  %v371_v17 = vor.u32 8388608, %v370_v62 }
 0x167   : > { %v373_v58 = vadd.s32 1, %v783_v57  ;;  %v411_v32 = vshll.u32 %v371_v17, 8 }
 0x169   : > { %vm374_vm1 = vcmp.gt.s32.totalorder %v373_v58, 0 }
 0x16a   : > { %v375_v60 = vsel %vm374_vm1, %v373_v58, 0 }
 0x16b   : > { %v377_v61 = vand.u32 31, %v375_v60  ;;  %v376_v0 = vshrl.u32 %v375_v60, 5 }
 0x16d   : > { %v378_v63 = vsub.s32 32, %v377_v61  ;;  %v380_v2 = vshll.u32 %v1208_v1, %v377_v61  ;;  %v383_v4 = vshll.u32 %v1209_v3, %v377_v61  ;;  %v386_v8 = vshll.u32 %v1210_v6, %v377_v61 }
 0x16e   : > { %v389_v11 = vshll.u32 %v1211_v9, %v377_v61  ;;  %v392_v14 = vshll.u32 %v1212_v12, %v377_v61  ;;  %vm395_vm2 = vcmp.lt.s32.totalorder %v376_v0, 1  ;;  %vm398_vm3 = vcmp.lt.s32.totalorder %v376_v0, 4 }
 0x16f   : > { %v381_v5 = vshrl.u32 %v1209_v3, %v378_v63  ;;  %v384_v7 = vshrl.u32 %v1210_v6, %v378_v63  ;;  %v387_v10 = vshrl.u32 %v1211_v9, %v378_v63  ;;  %v390_v13 = vshrl.u32 %v1212_v12, %v378_v63 }
 0x170   : > { %v393_v16 = vshrl.u32 %v1213_v15, %v378_v63  ;;  %v379_v27 = vshrl.u32 %v1208_v1, %v378_v63  ;;  %vm397_vm4 = vcmp.lt.s32.totalorder %v376_v0, 3  ;;  %vm396_vm5 = vcmp.lt.s32.totalorder %v376_v0, 2 }
 0x171   : > { %v382_v18 = vor.u32 %v381_v5, %v380_v2  ;;  %v385_v19 = vor.u32 %v384_v7, %v383_v4  ;;  %v388_v20 = vor.u32 %v387_v10, %v386_v8  ;;  %v391_v21 = vor.u32 %v390_v13, %v389_v11 }
 0x172   : > { %v394_v22 = vor.u32 %v393_v16, %v392_v14 }
 0x173   : > { %v400_v23 = vsel %vm398_vm3, %v388_v20, 2102212464  ;;  %v403_v24 = vsel %vm395_vm2, %v382_v18, %v385_v19  ;;  %v407_v25 = vsel %vm395_vm2, %v385_v19, %v388_v20  ;;  %v404_v28 = vsel %vm398_vm3, %v391_v21, 920167782 }
 0x174   : > { %v408_v29 = vsel %vm398_vm3, %v394_v22, 1326507024  ;;  %v405_v30 = vsel %vm397_vm4, %v388_v20, %v404_v28  ;;  %v399_v33 = vsel %vm395_vm2, %v379_v27, %v382_v18  ;;  %v401_v34 = vsel %vm397_vm4, %v385_v19, %v400_v23  ;;  %v787_v27 = vld [vmem:[%s1575_s4] ss:$0 sm:$0xff] }
 0x175   : > { %v409_v31 = vsel %vm397_vm4, %v391_v21, %v408_v29  ;;  %v406_v35 = vsel %vm396_vm5, %v403_v24, %v405_v30  ;;  %v402_v41 = vsel %vm396_vm5, %v399_v33, %v401_v34 }
 0x176   : > { %v410_v36 = vsel %vm396_vm5, %v407_v25, %v409_v31  ;;  %v1473_v39 = vmul.u32.u64.low %v411_v32, %v406_v35  ;;  %v1474_v40 = vmul.u32.u64.high %v411_v32, %v406_v35, %v1473_v39  ;;  %v418_v43 = vmul.u32 %v411_v32, %v402_v41 }
 0x177   : > { %v1470_v37 = vmul.u32.u64.low %v411_v32, %v410_v36  ;;  %v1471_v38 = vmul.u32.u64.high %v411_v32, %v410_v36, %v1470_v37 }
 0x178   : > { %v421_v42 = vadd.s32 1, %v1474_v40 }
 0x179   : > { %vm420_vm6 = vc.u32 %v1471_v38, %v1473_v39  ;;  %v419_v56 = vadd.s32 %v1473_v39, %v1471_v38 }
 0x17a   : > { %v422_v44 = vsel %vm420_vm6, %v421_v42, %v1474_v40 }
 0x17b   : > { %v423_v45 = vadd.s32 %v422_v44, %v418_v43 }
 0x17d   : > { %v424_v46 = vadd.s32 536870912, %v423_v45 }
 0x17f   : > { %v425_v47 = vshrl.u32 %v424_v46, 30 }
 0x181   : > { %v426_v48 = vshll.u32 %v425_v47, 30  ;;  %v449_v8 = vsub.s32 4, %v425_v47 }
 0x183   : > { %v427_v49 = vsub.s32 %v423_v45, %v426_v48  ;;  %v450_v13 = vsel %vm365_vm8, %v449_v8, %v425_v47 }
 0x184   : > { %v452_v16 = vsel %vm364_vm9, 0, %v450_v13 }
 0x185   : > { %v429_v50 = vsub.s32 0, %v427_v49  ;;  %v456_v17 = vadd.s32 3, %v452_v16 }
 0x187   : > { %v784_v51 = vmin.u32 %v429_v50, %v427_v49  ;;  %v457_v18 = vand.u32 3, %v456_v17 }
 0x189   : > { %v431_v52 = vclz %v784_v51  ;;  %vm462_vm10 = vcmp.eq.s32.totalorder %v457_v18, 2  ;;  %vm459_vm11 = vcmp.eq.s32.totalorder %v457_v18, 0  ;;  %vm458_vm12 = vcmp.lt.s32.totalorder %v457_v18, 2 }
 0x18b   : > { %v785_v54 = vadd.s32 4294967294, %v431_v52 }
 0x18d   : > { %vm786_vm7 = vcmp.lt.s32.totalorder %v785_v54, 0 }
 0x18e   : > { %v434_v55 = vsel %vm786_vm7, 0, %v785_v54 }
 0x18f   : > { %v435_v57 = vsub.s32 32, %v434_v55  ;;  %v439_v58 = vsub.s32 4294967266, %v434_v55  ;;  %v436_v60 = vshll.u32 %v427_v49, %v434_v55 }
 0x191   : > { %v437_v61 = vshrl.u32 %v419_v56, %v435_v57  ;;  %v440_v62 = vadd.s32 127, %v439_v58 }
 0x193   : > { %v438_v63 = vor.u32 %v437_v61, %v436_v60  ;;  %v441_v0 = vshll.u32 %v440_v62, 23 }
 0x195   : > { %v442_v2 = vor.u32 4788187, %v441_v0  ;;  %v445_v5 = vcvt.s32.f32 %v438_v63 }
 0x197   : > { %v443_v4 = vand.u32 2147483647, %v442_v2 }
 0x199   : > { %v446_v7 = vmul.f32 %v445_v5, %v443_v4 }
 0x19b   : > { %v447_v10 = vxor.u32 2147483648, %v446_v7 }
 0x19d   : > { %v448_v11 = vsel %vm365_vm8, %v447_v10, %v446_v7 }
 0x19e   : > { %v451_v14 = vsel %vm364_vm9, %v1453_v53, %v448_v11 }
 0x19f   : > { %1034 = vcosq.f32 %v451_v14 }
 0x1a0   : > { %1036 = vsinq.f32 %v451_v14 }
 0x1a9   : > { %v1035_v19 = vpop.eup %1034 }
 0x1aa   : > { %v1037_v20 = vpop.eup %1036  ;;  %v463_v21 = vxor.u32 2147483648, %v1035_v19 }
 0x1ab   : > { %v460_v22 = vxor.u32 2147483648, %v1037_v20 }
 0x1ac   : > { %v464_v23 = vsel %vm462_vm10, %v463_v21, %v1037_v20 }
 0x1ad   : > { %v461_v24 = vsel %vm459_vm11, %v1035_v19, %v460_v22 }
 0x1ae   : > { %v465_v59 = vsel %vm458_vm12, %v461_v24, %v464_v23 }
 0x1af   : > { %v466_v25 = vsel %vm455_vm13, nan, %v465_v59 }
 0x1b0   : > { %898 = vmatmul.mubr.f32.vlgmr.msra.gmra.mrb[0].mxu1 %v466_v25 }
 0x283   : > { %v556_v28 = vpop.f32.mrb[0].mxu1 }
 0x284   : > { %v1488_v29 = vadd.f32 %v787_v27, %v556_v28  ;;  %v899_v30 = vpop.f32.mrb[1].mxu1 }
 0x286   : > { %v563_v31 = vand.u32 2139095040, %v1488_v29  ;;  %v560_v35 = vand.u32 2147483647, %v1488_v29  ;;  %vm562_vm5 = vcmp.lt.s32.totalorder %v1488_v29, 0  ;;  %vm652_vm10 = vweird.f32 %v1488_v29 }
 0x288   : > { %v564_v32 = vshrl.u32 %v563_v31, 23  ;;  %v567_v37 = vand.u32 8388607, %v560_v35  ;;  %vm561_vm6 = vcmp.le.f32.partialorder %v560_v35, 0.7853982 }
 0x28a   : > { %v788_v33 = vadd.s32 4294967169, %v564_v32  ;;  %v568_v50 = vor.u32 8388608, %v567_v37 }
 0x28c   : > { %v570_v34 = vadd.s32 1, %v788_v33 }
 0x28e   : > { %vm571_vm14 = vcmp.gt.s32.totalorder %v570_v34, 0 }
 0x28f   : > { %v572_v53 = vsel %vm571_vm14, %v570_v34, 0 }
 0x290   : > { %v574_v36 = vand.u32 31, %v572_v53  ;;  %v573_v39 = vshrl.u32 %v572_v53, 5 }
 0x292   : > { %v575_v38 = vsub.s32 32, %v574_v36  ;;  %v577_v40 = vshll.u32 %v1208_v1, %v574_v36  ;;  %v580_v41 = vshll.u32 %v1209_v3, %v574_v36  ;;  %v583_v44 = vshll.u32 %v1210_v6, %v574_v36 }
 0x293   : > { %v586_v46 = vshll.u32 %v1211_v9, %v574_v36  ;;  %v589_v48 = vshll.u32 %v1212_v12, %v574_v36  ;;  %vm592_vm15 = vcmp.lt.s32.totalorder %v573_v39, 1  ;;  %vm595_vm0 = vcmp.lt.s32.totalorder %v573_v39, 4 }
 0x294   : > { %v578_v42 = vshrl.u32 %v1209_v3, %v575_v38  ;;  %v581_v43 = vshrl.u32 %v1210_v6, %v575_v38  ;;  %v584_v45 = vshrl.u32 %v1211_v9, %v575_v38  ;;  %v587_v47 = vshrl.u32 %v1212_v12, %v575_v38 }
 0x295   : > { %v590_v49 = vshrl.u32 %v1213_v15, %v575_v38  ;;  %v576_v58 = vshrl.u32 %v1208_v1, %v575_v38  ;;  %vm594_vm1 = vcmp.lt.s32.totalorder %v573_v39, 3  ;;  %vm593_vm2 = vcmp.lt.s32.totalorder %v573_v39, 2 }
 0x296   : > { %v579_v51 = vor.u32 %v578_v42, %v577_v40  ;;  %v582_v52 = vor.u32 %v581_v43, %v580_v41  ;;  %v585_v54 = vor.u32 %v584_v45, %v583_v44  ;;  %v588_v55 = vor.u32 %v587_v47, %v586_v46 }
 0x297   : > { %v591_v3 = vor.u32 %v590_v49, %v589_v48  ;;  %v608_v15 = vshll.u32 %v568_v50, 8 }
 0x298   : > { %v597_v56 = vsel %vm595_vm0, %v585_v54, 2102212464  ;;  %v600_v6 = vsel %vm592_vm15, %v579_v51, %v582_v52  ;;  %v604_v57 = vsel %vm592_vm15, %v582_v52, %v585_v54  ;;  %v601_v9 = vsel %vm595_vm0, %v588_v55, 920167782 }
 0x299   : > { %v605_v60 = vsel %vm595_vm0, %v591_v3, 1326507024  ;;  %v602_v12 = vsel %vm594_vm1, %v585_v54, %v601_v9  ;;  %v596_v62 = vsel %vm592_vm15, %v576_v58, %v579_v51  ;;  %v598_v63 = vsel %vm594_vm1, %v582_v52, %v597_v56 }
 0x29a   : > { %v606_v61 = vsel %vm594_vm1, %v588_v55, %v605_v60  ;;  %v603_v0 = vsel %vm593_vm2, %v600_v6, %v602_v12  ;;  %v599_v10 = vsel %vm593_vm2, %v596_v62, %v598_v63 }
 0x29b   : > { %v607_v2 = vsel %vm593_vm2, %v604_v57, %v606_v61  ;;  %v1508_v7 = vmul.u32.u64.low %v608_v15, %v603_v0  ;;  %v1509_v8 = vmul.u32.u64.high %v608_v15, %v603_v0, %v1508_v7  ;;  %v615_v11 = vmul.u32 %v608_v15, %v599_v10 }
 0x29c   : > { %v1505_v4 = vmul.u32.u64.low %v608_v15, %v607_v2  ;;  %v1506_v5 = vmul.u32.u64.high %v608_v15, %v607_v2, %v1505_v4 }
 0x29d   : > { %v618_v1 = vadd.s32 1, %v1509_v8 }
 0x29e   : > { %vm617_vm3 = vc.u32 %v1506_v5, %v1508_v7  ;;  %v616_v59 = vadd.s32 %v1508_v7, %v1506_v5 }
 0x29f   : > { %v619_v13 = vsel %vm617_vm3, %v618_v1, %v1509_v8 }
 0x2a0   : > { %v620_v14 = vadd.s32 %v619_v13, %v615_v11 }
 0x2a2   : > { %v621_v16 = vadd.s32 536870912, %v620_v14 }
 0x2a4   : > { %v622_v17 = vshrl.u32 %v621_v16, 30 }
 0x2a6   : > { %v623_v18 = vshll.u32 %v622_v17, 30  ;;  %v646_v38 = vsub.s32 4, %v622_v17 }
 0x2a8   : > { %v624_v19 = vsub.s32 %v620_v14, %v623_v18  ;;  %v647_v41 = vsel %vm562_vm5, %v646_v38, %v622_v17 }
 0x2a9   : > { %v649_v43 = vsel %vm561_vm6, 0, %v647_v41 }
 0x2aa   : > { %v626_v20 = vsub.s32 0, %v624_v19  ;;  %v653_v44 = vadd.s32 3, %v649_v43 }
 0x2ac   : > { %v789_v21 = vmin.u32 %v626_v20, %v624_v19  ;;  %v654_v45 = vand.u32 3, %v653_v44 }
 0x2ae   : > { %v628_v22 = vclz %v789_v21  ;;  %vm659_vm7 = vcmp.eq.s32.totalorder %v654_v45, 2  ;;  %vm656_vm8 = vcmp.eq.s32.totalorder %v654_v45, 0  ;;  %vm655_vm9 = vcmp.lt.s32.totalorder %v654_v45, 2 }
 0x2b0   : > { %v790_v23 = vadd.s32 4294967294, %v628_v22 }
 0x2b2   : > { %vm791_vm4 = vcmp.lt.s32.totalorder %v790_v23, 0 }
 0x2b3   : > { %v631_v24 = vsel %vm791_vm4, 0, %v790_v23 }
 0x2b4   : > { %v632_v25 = vsub.s32 32, %v631_v24  ;;  %v636_v27 = vsub.s32 4294967266, %v631_v24  ;;  %v633_v28 = vshll.u32 %v624_v19, %v631_v24 }
 0x2b6   : > { %v634_v30 = vshrl.u32 %v616_v59, %v632_v25  ;;  %v637_v31 = vadd.s32 127, %v636_v27 }
 0x2b8   : > { %v635_v32 = vor.u32 %v634_v30, %v633_v28  ;;  %v638_v33 = vshll.u32 %v637_v31, 23 }
 0x2ba   : > { %v639_v34 = vor.u32 4788187, %v638_v33  ;;  %v642_v36 = vcvt.s32.f32 %v635_v32 }
 0x2bc   : > { %v640_v53 = vand.u32 2147483647, %v639_v34 }
 0x2be   : > { %v643_v37 = vmul.f32 %v642_v36, %v640_v53 }
 0x2c0   : > { %v644_v39 = vxor.u32 2147483648, %v643_v37 }
 0x2c2   : > { %v645_v40 = vsel %vm562_vm5, %v644_v39, %v643_v37 }
 0x2c3   : > { %v648_v42 = vsel %vm561_vm6, %v1488_v29, %v645_v40 }
 0x2c4   : > { %1038 = vcosq.f32 %v648_v42 }
 0x2c5   : > { %1040 = vsinq.f32 %v648_v42 }
 0x2ce   : > { %v1039_v46 = vpop.eup %1038 }
 0x2cf   : > { %v1041_v47 = vpop.eup %1040  ;;  %v660_v48 = vxor.u32 2147483648, %v1039_v46 }
 0x2d0   : > { %v657_v49 = vxor.u32 2147483648, %v1041_v47 }
 0x2d1   : > { %v661_v50 = vsel %vm659_vm7, %v660_v48, %v1041_v47 }
 0x2d2   : > { %v658_v35 = vsel %vm656_vm8, %v1039_v46, %v657_v49 }
 0x2d3   : > { %v662_v51 = vsel %vm655_vm9, %v658_v35, %v661_v50 }
 0x2d4   : > { %v663_v52 = vsel %vm652_vm10, nan, %v662_v51 }
 0x2d5   : > { %v664_v54 = vadd.f32 %v663_v52, %v1440_v26 }
 0x2d7   : > { %v665_v55 = vmul.f32 0.5, %v664_v54 }
 0x2d9   : > { %666 = vst [vmem:[%s268_s28] sm:$0xff] %v665_v55 }
 0x2da   : > { %1141 = shalt.err (!%p1138_p2)
}
 0x2db   : > { %s1142_s12 = scalar_lea.hbm %s1527_s15, 128  ;;  %s1146_s26 = scalar_lea.hbm %s1576_s5, 256 }
 0x2dc   : > { %p1143_p13 = scmp.ne.s32.totalorder %s1527_s15, %s1142_s12  ;;  %p1147_p4 = scmp.lt.u32.totalorder %s1527_s15, %s1576_s5 }
 0x2dd   : > { %p1148_p5 = scmp.lt.u32.totalorder %s1146_s26, %s1142_s12  ;;  %p1150_p11 = scmp.lt.u32.totalorder %s1142_s12, %s1527_s15 }
 0x2de   : > { %p1144_p6 = pnand %p1143_p13, %p1590_p0 }
 0x2df   : > { %p1149_p8 = por %p1148_p5, %p1147_p4 }
 0x2e0   : > { %p1145_p10 = pneg %p1144_p6 }
 0x2e1   : > { %p1151_p1 = por %p1150_p11, %p1149_p8 }
 0x2e3   : > { %p1152_p3 = pnand %p1151_p1, %p1145_p10 }
 0x2e5   : > { %1155 = shalt.err (!%p1152_p3)
}
 0x2e6   : > { %966 = dma.vmem_to_hbm [thread:$0]  (%p1590_p0), %s1529_s7, 128, %s1527_s15, %s668_s16  }
 0x2e7 PF: > { %s693_s11 = sand.u32 1, %s1186_s18   ;;  %p1591_p7 = scmp.ne.s32.totalorder %s1581_s25, 0 }
 0x2e8   : > { %p1592_p9 = scmp.ge.s32.totalorder %s1198_s21, 2  ;;  %s694_s28 = scalar_lea.sflag [#allocation4], %s693_s11 }
 0x2ea   : > { %p980_p12 = pnand %p1592_p9, %p1591_p7 }
 0x2ec   : > { %1181 = dma.done.wait (!%p980_p12), %s694_s28, 128  }
 0x2ed   : > { %1183 = vsyncadd (!%p980_p12), %s694_s28, 4294967168  ;;  %p19_p2 = scmp.ge.s32.totalorder %s1355_s14, 4   ;;  %s1593_s18 = smov %s1190_s19 }
 0x2ee   : > { %s1594_s19 = smov %s1194_s20  ;;  %s1595_s20 = smov %s1371_s27 }
 0x2ef   : > { %s1596_s21 = smov %s1355_s14  ;;  %21 = sbr.rel (!%p19_p2) target bundleno = 6 (0x6), region = 93 }
 0x2f6   :  { %699 = vsyncpa [#allocation3], 1 }
 0x2f7   :  { %701 = vsyncpa [#allocation3 + $0x1], 1 }
 0x2f8   :  { %702 = vsyncpa [#allocation6], 1 }
 0x2f9   :  { %703 = vsyncpa [#allocation4], 1 }
 0x2fa   :  { %705 = vsyncpa [#allocation4 + $0x1], 1 }

</bundles_post_ra>
